<compile_context>
chip_gen: v6e
topology: v6e:2x2x1
jax: 0.10.0
libtpu: 0.0.40
codegen_flags: <defaults>
</compile_context>

<pallas_src>
import math

import jax
import jax.numpy as jnp
from jax.experimental import pallas as pl
from jax.experimental.pallas import tpu as pltpu

# ---- small config consistent with the traced forward ----
B = 2
IN_C = 3
IMG = 16
PATCH = 8
GRID = IMG // PATCH              # 2
NUM_PATCHES = GRID * GRID        # 4
EMBED = 128
NUM_HEADS = 2
HEAD_DIM = EMBED // NUM_HEADS    # 64 -> scale 0.125 matches the traced mul constant
SCALE = HEAD_DIM ** -0.5
MLP_HIDDEN = 4 * EMBED           # 512
NUM_CLASSES = 16
N_TOK = NUM_PATCHES + 1          # 5 real tokens per image
N_PAD = 8                        # token axis padded to a sublane multiple
BN = B * N_PAD                   # 16 folded rows
K_PATCH = IN_C * PATCH * PATCH   # 192 (im2col contraction)
K_PAD = 256                      # contraction padded to 2 full lane groups
HEAD_PAD = 128                   # lane-dense classifier output width
EPS = 1e-6
NEG_INF = -1e9

# packed weight slab lane offsets: [ wqkv | wproj | w1 | head_w ]
W_QKV0, W_QKV1 = 0, 3 * EMBED                       # 0:384
W_PRJ0, W_PRJ1 = 3 * EMBED, 4 * EMBED               # 384:512
W_W10, W_W11 = 4 * EMBED, 4 * EMBED + MLP_HIDDEN    # 512:1024
W_HD0, W_HD1 = W_W11, W_W11 + HEAD_PAD              # 1024:1152
WSLAB_W = W_HD1                                     # 1152

# packed vector slab rows (each row zero-padded to VEC_W lanes)
VEC_W = 512
(R_LN1W, R_LN1B, R_BQKV, R_BPROJ, R_LN2W, R_LN2B,
 R_B1, R_B2, R_NORMW, R_NORMB, R_HEADB) = range(11)
VEC_ROWS = 16                                       # padded to a full sublane tile


def _layernorm(x, w, b):
    # two independent XLU reductions; var = E[x^2] - mu^2
    mu = jnp.mean(x, axis=-1, keepdims=True)
    ms = jnp.mean(x * x, axis=-1, keepdims=True)
    var = ms - mu * mu
    return (x - mu) * jax.lax.rsqrt(var + EPS) * w + b


def _gelu(x):
    # TODO(synk): PyTorch nn.GELU() is exact erf-GELU; tanh approximation used here for
    # Mosaic-safe lowering (max abs error ~1e-3).
    c = math.sqrt(2.0 / math.pi)
    return 0.5 * x * (1.0 + jnp.tanh(c * (x + 0.044715 * x * x * x)))


# --------------------------- fused ViT kernel --------------------------------
def fused_vit_kernel(p_ref, convw_ref, add_ref, bias_ref,
                     wslab_ref, w2_ref, vecs_ref, o_ref):
    f32 = jnp.float32
    bf16 = jnp.bfloat16

    # ---- unpack the operand slabs with static, lane-aligned slices ----
    ln1_w = vecs_ref[R_LN1W:R_LN1W + 1, 0:EMBED]
    ln1_b = vecs_ref[R_LN1B:R_LN1B + 1, 0:EMBED]
    bqkv = vecs_ref[R_BQKV:R_BQKV + 1, 0:3 * EMBED]
    bproj = vecs_ref[R_BPROJ:R_BPROJ + 1, 0:EMBED]
    ln2_w = vecs_ref[R_LN2W:R_LN2W + 1, 0:EMBED]
    ln2_b = vecs_ref[R_LN2B:R_LN2B + 1, 0:EMBED]
    b1 = vecs_ref[R_B1:R_B1 + 1, 0:MLP_HIDDEN]
    b2 = vecs_ref[R_B2:R_B2 + 1, 0:EMBED]
    norm_w = vecs_ref[R_NORMW:R_NORMW + 1, 0:EMBED]
    norm_b = vecs_ref[R_NORMB:R_NORMB + 1, 0:EMBED]
    head_b = vecs_ref[R_HEADB:R_HEADB + 1, 0:HEAD_PAD]

    wqkv = wslab_ref[:, W_QKV0:W_QKV1]
    wproj = wslab_ref[:, W_PRJ0:W_PRJ1]
    w1 = wslab_ref[:, W_W10:W_W11]
    head_w = wslab_ref[:, W_HD0:W_HD1]

    # ---- patch embedding; cls token, pos embedding and conv bias are pre-folded
    #      into add_ref (zero rows of p_ref contribute nothing there)
    tok = jnp.dot(p_ref[...], convw_ref[...],
                  preferred_element_type=f32) + add_ref[...]            # (BN, D) f32

    # ---- attention: whole batch folded into rows, block-diag bias keeps images apart
    h = _layernorm(tok, ln1_w, ln1_b)
    qkv = jnp.dot(h.astype(bf16), wqkv, preferred_element_type=f32) + bqkv   # (BN, 3D)
    q = qkv[:, :EMBED]
    k = qkv[:, EMBED:2 * EMBED]
    v = qkv[:, 2 * EMBED:]
    bias = bias_ref[...]                                                # (BN, BN)
    head_outs = []
    for hd in range(NUM_HEADS):
        sl = slice(hd * HEAD_DIM, (hd + 1) * HEAD_DIM)
        qh = q[:, sl].astype(bf16)
        kh = k[:, sl].astype(bf16)
        vh = v[:, sl].astype(bf16)
        s = jax.lax.dot_general(qh, kh, (((1,), (1,)), ((), ())),
                                preferred_element_type=f32) * SCALE + bias
        s = s - jnp.max(s, axis=-1, keepdims=True)
        p = jnp.exp(s)
        p = p * pl.reciprocal(jnp.sum(p, axis=-1, keepdims=True), approx=True)
        head_outs.append(jnp.dot(p.astype(bf16), vh,
                                 preferred_element_type=f32))           # (BN, Hd)
    # lane-concat both head outputs (vreg-resident) -> single K=128 projection matmul
    attn_cat = jnp.concatenate(head_outs, axis=-1)                      # (BN, D)
    attn = jnp.dot(attn_cat.astype(bf16), wproj,
                   preferred_element_type=f32) + bproj
    x1 = tok + attn                                                     # residual 1

    # ---- MLP ----
    h2 = _layernorm(x1, ln2_w, ln2_b)
    m = jnp.dot(h2.astype(bf16), w1, preferred_element_type=f32) + b1
    m = _gelu(m)
    m = jnp.dot(m.astype(bf16), w2_ref[...], preferred_element_type=f32) + b2
    x2 = x1 + m                                                         # residual 2

    # ---- final LayerNorm + classifier head (lane-dense 128-wide output);
    #      the wrapper picks the cls rows and the real NUM_CLASSES lanes
    hf = _layernorm(x2, norm_w, norm_b)
    o_ref[...] = (jnp.dot(hf.astype(bf16), head_w, preferred_element_type=f32)
                  + head_b).astype(o_ref.dtype)


# ------------------- one-time constant preparation (hoisted) -------------------
def prepare_constants(conv_w, conv_b, cls_token, pos_embed, params):
    # conv weight as (K_PAD, D) bf16, (C, ph, pw) flatten order, K zero-padded 192->256
    conv_w_km = conv_w.reshape(EMBED, K_PATCH).T                       # (192, 128)
    conv_w_km = (jnp.zeros((K_PAD, EMBED), jnp.float32)
                 .at[:K_PATCH, :].set(conv_w_km).astype(jnp.bfloat16))

    # additive term folding cls token, pos embedding and conv bias per row
    add = jnp.zeros((B, N_PAD, EMBED), jnp.float32)
    add = add.at[:, 0, :].set(cls_token[0, 0] + pos_embed[0, 0])
    add = add.at[:, 1:1 + NUM_PATCHES, :].set(pos_embed[0, 1:] + conv_b[None, :])
    add = add.reshape(BN, EMBED)

    # block-diagonal attention bias: key must be in same image AND be a real token
    rows = jnp.arange(BN)
    same_img = (rows[:, None] // N_PAD) == (rows[None, :] // N_PAD)
    real_key = (rows[None, :] % N_PAD) < N_TOK
    bias = jnp.where(same_img & real_key, 0.0, NEG_INF).astype(jnp.float32)

    # lane-dense classifier weights (pad NUM_CLASSES -> 128 output lanes with zeros)
    head_w = (jnp.zeros((EMBED, HEAD_PAD), jnp.float32)
              .at[:, :NUM_CLASSES].set(params['head_w']))
    head_b = (jnp.zeros((HEAD_PAD,), jnp.float32)
              .at[:NUM_CLASSES].set(params['head_b'].reshape(-1)))

    # packed bf16 weight slab: [ wqkv | wproj | w1 | head_w ] -> (128, 1152)
    wslab = jnp.concatenate(
        [params['wqkv'], params['wproj'], params['w1'], head_w],
        axis=1).astype(jnp.bfloat16)
    w2 = params['w2'].astype(jnp.bfloat16)                             # (512, 128)

    # packed f32 vector slab: one LN/bias vector per row, zero-padded to 512 lanes
    def row(v, width):
        return jnp.zeros((VEC_W,), jnp.float32).at[:width].set(v.reshape(-1))

    vec_rows = [
        row(params['ln1_w'], EMBED), row(params['ln1_b'], EMBED),
        row(params['bqkv'], 3 * EMBED), row(params['bproj'], EMBED),
        row(params['ln2_w'], EMBED), row(params['ln2_b'], EMBED),
        row(params['b1'], MLP_HIDDEN), row(params['b2'], EMBED),
        row(params['norm_w'], EMBED), row(params['norm_b'], EMBED),
        row(head_b, HEAD_PAD),
    ]
    vec_rows += [jnp.zeros((VEC_W,), jnp.float32)] * (VEC_ROWS - len(vec_rows))
    vecs = jnp.stack(vec_rows, axis=0)                                  # (16, 512)

    return dict(conv_w_km=conv_w_km, add=add, bias=bias,
                wslab=wslab, w2=w2, vecs=vecs)


# ----------------------------- per-call forward --------------------------------
def _vit_forward(x_nchw, consts):
    # im2col of non-overlapping patches, (C, ph, pw) flatten order matches conv weight
    p = x_nchw.reshape(B, IN_C, GRID, PATCH, GRID, PATCH)
    p = p.transpose(0, 2, 4, 1, 3, 5).reshape(B, NUM_PATCHES, K_PATCH)
    # pad tokens to N_PAD rows per image (row 0 = cls slot) and K to K_PAD; cast bf16
    p_pad = jnp.zeros((B, N_PAD, K_PAD), jnp.float32)
    p_pad = (p_pad.at[:, 1:1 + NUM_PATCHES, :K_PATCH].set(p)
             .reshape(BN, K_PAD).astype(jnp.bfloat16))

    out = pl.pallas_call(
        fused_vit_kernel,
        out_shape=jax.ShapeDtypeStruct((BN, HEAD_PAD), jnp.float32),
    )(p_pad, consts['conv_w_km'], consts['add'], consts['bias'],
      consts['wslab'], consts['w2'], consts['vecs'])
    # cls token sits on row b*N_PAD; real logits in the first NUM_CLASSES lanes
    return out[0::N_PAD, :NUM_CLASSES]


vit_forward = jax.jit(_vit_forward)


# ----------------------------- init --------------------------------------------
def init_params(key):
    ks = jax.random.split(key, 8)

    def trunc(k, shape, std):
        return jax.random.truncated_normal(k, -2.0, 2.0, shape, jnp.float32) * std

    fan_out = EMBED * PATCH * PATCH                          # kaiming fan_out for conv
    conv_w = jax.random.normal(ks[0], (EMBED, IN_C, PATCH, PATCH),
                               jnp.float32) * math.sqrt(2.0 / fan_out)
    conv_b = jnp.zeros((EMBED,), jnp.float32)
    cls_token = trunc(ks[1], (1, 1, EMBED), 0.02)
    pos_embed = trunc(ks[2], (1, N_TOK, EMBED), 0.02)
    params = {
        'ln1_w': jnp.ones((1, EMBED), jnp.float32),
        'ln1_b': jnp.zeros((1, EMBED), jnp.float32),
        'wqkv': trunc(ks[3], (3 * EMBED, EMBED), 0.01).T,    # stored (in, out)
        'bqkv': jnp.zeros((1, 3 * EMBED), jnp.float32),
        'wproj': trunc(ks[4], (EMBED, EMBED), 0.01).T,
        'bproj': jnp.zeros((1, EMBED), jnp.float32),
        'ln2_w': jnp.ones((1, EMBED), jnp.float32),
        'ln2_b': jnp.zeros((1, EMBED), jnp.float32),
        'w1': trunc(ks[5], (MLP_HIDDEN, EMBED), 0.01).T,
        'b1': jnp.zeros((1, MLP_HIDDEN), jnp.float32),
        'w2': trunc(ks[6], (EMBED, MLP_HIDDEN), 0.01).T,
        'b2': jnp.zeros((1, EMBED), jnp.float32),
        'norm_w': jnp.ones((1, EMBED), jnp.float32),
        'norm_b': jnp.zeros((1, EMBED), jnp.float32),
        'head_w': trunc(ks[7], (NUM_CLASSES, EMBED), 0.01).T,
        'head_b': jnp.zeros((1, NUM_CLASSES), jnp.float32),
    }
    return conv_w, conv_b, cls_token, pos_embed, params


if __name__ == "__main__":
    key = jax.random.PRNGKey(0)
    kx, kp = jax.random.split(key)
    x = jax.random.normal(kx, (B, IN_C, IMG, IMG), jnp.float32)
    conv_w, conv_b, cls_token, pos_embed, params = init_params(kp)

    # hoisted, call-invariant preprocessing (runs once)
    consts = prepare_constants(conv_w, conv_b, cls_token, pos_embed, params)
    consts = jax.tree_util.tree_map(jax.block_until_ready, consts)

    logits = vit_forward(x, consts)
    logits = jax.block_until_ready(logits)
    assert logits.shape == (B, NUM_CLASSES)
    assert bool(jnp.all(jnp.isfinite(logits)))
    print("KERNEL_OK")
</pallas_src>

<mosaic_0001>
module attributes {stable_mosaic.version = 11 : i64} {
  func.func @fused_vit_kernel(%arg0: memref<16x256xbf16, #tpu.memory_space<vmem>>, %arg1: memref<256x128xbf16, #tpu.memory_space<vmem>>, %arg2: memref<16x128xf32, #tpu.memory_space<vmem>>, %arg3: memref<16x16xf32, #tpu.memory_space<vmem>>, %arg4: memref<128x1152xbf16, #tpu.memory_space<vmem>>, %arg5: memref<512x128xbf16, #tpu.memory_space<vmem>>, %arg6: memref<16x512xf32, #tpu.memory_space<vmem>>, %arg7: memref<16x128xf32, #tpu.memory_space<vmem>>) attributes {dimension_semantics = [], scalar_prefetch = 0 : i64, scratch_operands = 0 : i64, tpu.core_type = #tpu.core_type<tc>} {
    %c0 = arith.constant 0 : index
    %c0_0 = arith.constant 0 : index
    %0 = vector.load %arg6[%c0, %c0_0] : memref<16x512xf32, #tpu.memory_space<vmem>>, vector<1x128xf32>
    %c1 = arith.constant 1 : index
    %c0_1 = arith.constant 0 : index
    %1 = vector.load %arg6[%c1, %c0_1] : memref<16x512xf32, #tpu.memory_space<vmem>>, vector<1x128xf32>
    %c2 = arith.constant 2 : index
    %c0_2 = arith.constant 0 : index
    %2 = vector.load %arg6[%c2, %c0_2] : memref<16x512xf32, #tpu.memory_space<vmem>>, vector<1x384xf32>
    %c3 = arith.constant 3 : index
    %c0_3 = arith.constant 0 : index
    %3 = vector.load %arg6[%c3, %c0_3] : memref<16x512xf32, #tpu.memory_space<vmem>>, vector<1x128xf32>
    %c4 = arith.constant 4 : index
    %c0_4 = arith.constant 0 : index
    %4 = vector.load %arg6[%c4, %c0_4] : memref<16x512xf32, #tpu.memory_space<vmem>>, vector<1x128xf32>
    %c5 = arith.constant 5 : index
    %c0_5 = arith.constant 0 : index
    %5 = vector.load %arg6[%c5, %c0_5] : memref<16x512xf32, #tpu.memory_space<vmem>>, vector<1x128xf32>
    %c6 = arith.constant 6 : index
    %c0_6 = arith.constant 0 : index
    %6 = vector.load %arg6[%c6, %c0_6] : memref<16x512xf32, #tpu.memory_space<vmem>>, vector<1x512xf32>
    %c7 = arith.constant 7 : index
    %c0_7 = arith.constant 0 : index
    %7 = vector.load %arg6[%c7, %c0_7] : memref<16x512xf32, #tpu.memory_space<vmem>>, vector<1x128xf32>
    %c8 = arith.constant 8 : index
    %c0_8 = arith.constant 0 : index
    %8 = vector.load %arg6[%c8, %c0_8] : memref<16x512xf32, #tpu.memory_space<vmem>>, vector<1x128xf32>
    %c9 = arith.constant 9 : index
    %c0_9 = arith.constant 0 : index
    %9 = vector.load %arg6[%c9, %c0_9] : memref<16x512xf32, #tpu.memory_space<vmem>>, vector<1x128xf32>
    %c10 = arith.constant 10 : index
    %c0_10 = arith.constant 0 : index
    %10 = vector.load %arg6[%c10, %c0_10] : memref<16x512xf32, #tpu.memory_space<vmem>>, vector<1x128xf32>
    %c0_11 = arith.constant 0 : index
    %c0_12 = arith.constant 0 : index
    %11 = vector.load %arg4[%c0_11, %c0_12] : memref<128x1152xbf16, #tpu.memory_space<vmem>>, vector<128x384xbf16>
    %c0_13 = arith.constant 0 : index
    %c384 = arith.constant 384 : index
    %12 = vector.load %arg4[%c0_13, %c384] : memref<128x1152xbf16, #tpu.memory_space<vmem>>, vector<128x128xbf16>
    %c0_14 = arith.constant 0 : index
    %c512 = arith.constant 512 : index
    %13 = vector.load %arg4[%c0_14, %c512] : memref<128x1152xbf16, #tpu.memory_space<vmem>>, vector<128x512xbf16>
    %c0_15 = arith.constant 0 : index
    %c1024 = arith.constant 1024 : index
    %14 = vector.load %arg4[%c0_15, %c1024] : memref<128x1152xbf16, #tpu.memory_space<vmem>>, vector<128x128xbf16>
    %c0_16 = arith.constant 0 : index
    %c0_17 = arith.constant 0 : index
    %15 = vector.load %arg0[%c0_16, %c0_17] : memref<16x256xbf16, #tpu.memory_space<vmem>>, vector<16x256xbf16>
    %c0_18 = arith.constant 0 : index
    %c0_19 = arith.constant 0 : index
    %16 = vector.load %arg1[%c0_18, %c0_19] : memref<256x128xbf16, #tpu.memory_space<vmem>>, vector<256x128xbf16>
    %cst = arith.constant dense<0.000000e+00> : vector<16x128xf32>
    %17 = tpu.matmul %15, %16, %cst {dimension_numbers = #tpu.dot_dimension_numbers<[1], [0], [0], [1], [0, 0, 1, 1], [], []>} : vector<16x256xbf16>, vector<256x128xbf16>, vector<16x128xf32> -> vector<16x128xf32>
    %c0_20 = arith.constant 0 : index
    %c0_21 = arith.constant 0 : index
    %18 = vector.load %arg2[%c0_20, %c0_21] : memref<16x128xf32, #tpu.memory_space<vmem>>, vector<16x128xf32>
    %19 = arith.addf %17, %18 : vector<16x128xf32>
    %cst_22 = arith.constant dense<0.000000e+00> : vector<16xf32>
    %20 = vector.multi_reduction <add>, %19, %cst_22 [1] : vector<16x128xf32> to vector<16xf32>
    %21 = vector.shape_cast %20 : vector<16xf32> to vector<16x1xf32>
    %cst_23 = arith.constant 1.280000e+02 : f32
    %22 = vector.broadcast %cst_23 : f32 to vector<16x1xf32>
    %23 = arith.divf %21, %22 : vector<16x1xf32>
    %24 = arith.mulf %19, %19 : vector<16x128xf32>
    %cst_24 = arith.constant dense<0.000000e+00> : vector<16xf32>
    %25 = vector.multi_reduction <add>, %24, %cst_24 [1] : vector<16x128xf32> to vector<16xf32>
    %26 = vector.shape_cast %25 : vector<16xf32> to vector<16x1xf32>
    %cst_25 = arith.constant 1.280000e+02 : f32
    %27 = vector.broadcast %cst_25 : f32 to vector<16x1xf32>
    %28 = arith.divf %26, %27 : vector<16x1xf32>
    %29 = arith.mulf %23, %23 : vector<16x1xf32>
    %30 = arith.subf %28, %29 : vector<16x1xf32>
    %31 = vector.broadcast %23 : vector<16x1xf32> to vector<16x128xf32>
    %32 = arith.subf %19, %31 : vector<16x128xf32>
    %cst_26 = arith.constant 9.99999997E-7 : f32
    %33 = vector.broadcast %cst_26 : f32 to vector<16x1xf32>
    %34 = arith.addf %30, %33 : vector<16x1xf32>
    %35 = math.rsqrt %34 : vector<16x1xf32>
    %36 = vector.broadcast %35 : vector<16x1xf32> to vector<16x128xf32>
    %37 = arith.mulf %32, %36 : vector<16x128xf32>
    %38 = vector.broadcast %0 : vector<1x128xf32> to vector<16x128xf32>
    %39 = arith.mulf %37, %38 : vector<16x128xf32>
    %40 = vector.broadcast %1 : vector<1x128xf32> to vector<16x128xf32>
    %41 = arith.addf %39, %40 : vector<16x128xf32>
    %42 = arith.truncf %41 : vector<16x128xf32> to vector<16x128xbf16>
    %cst_27 = arith.constant dense<0.000000e+00> : vector<16x384xf32>
    %43 = tpu.matmul %42, %11, %cst_27 {dimension_numbers = #tpu.dot_dimension_numbers<[1], [0], [0], [1], [0, 0, 1, 1], [], []>} : vector<16x128xbf16>, vector<128x384xbf16>, vector<16x384xf32> -> vector<16x384xf32>
    %44 = vector.broadcast %2 : vector<1x384xf32> to vector<16x384xf32>
    %45 = arith.addf %43, %44 : vector<16x384xf32>
    %46 = vector.extract_strided_slice %45 {offsets = [0, 0], sizes = [16, 128], strides = [1, 1]} : vector<16x384xf32> to vector<16x128xf32>
    %47 = vector.extract_strided_slice %45 {offsets = [0, 128], sizes = [16, 128], strides = [1, 1]} : vector<16x384xf32> to vector<16x128xf32>
    %48 = vector.extract_strided_slice %45 {offsets = [0, 256], sizes = [16, 128], strides = [1, 1]} : vector<16x384xf32> to vector<16x128xf32>
    %c0_28 = arith.constant 0 : index
    %c0_29 = arith.constant 0 : index
    %49 = vector.load %arg3[%c0_28, %c0_29] : memref<16x16xf32, #tpu.memory_space<vmem>>, vector<16x16xf32>
    %50 = vector.extract_strided_slice %46 {offsets = [0, 0], sizes = [16, 64], strides = [1, 1]} : vector<16x128xf32> to vector<16x64xf32>
    %51 = arith.truncf %50 : vector<16x64xf32> to vector<16x64xbf16>
    %52 = vector.extract_strided_slice %47 {offsets = [0, 0], sizes = [16, 64], strides = [1, 1]} : vector<16x128xf32> to vector<16x64xf32>
    %53 = arith.truncf %52 : vector<16x64xf32> to vector<16x64xbf16>
    %54 = vector.extract_strided_slice %48 {offsets = [0, 0], sizes = [16, 64], strides = [1, 1]} : vector<16x128xf32> to vector<16x64xf32>
    %55 = arith.truncf %54 : vector<16x64xf32> to vector<16x64xbf16>
    %cst_30 = arith.constant dense<0.000000e+00> : vector<16x16xf32>
    %56 = tpu.matmul %51, %53, %cst_30 {dimension_numbers = #tpu.dot_dimension_numbers<[1], [1], [0], [0], [0, 0, 1, 0], [], []>} : vector<16x64xbf16>, vector<16x64xbf16>, vector<16x16xf32> -> vector<16x16xf32>
    %cst_31 = arith.constant 1.250000e-01 : f32
    %57 = vector.broadcast %cst_31 : f32 to vector<16x16xf32>
    %58 = arith.mulf %56, %57 : vector<16x16xf32>
    %59 = arith.addf %58, %49 : vector<16x16xf32>
    %cst_32 = arith.constant dense<0xFF800000> : vector<16xf32>
    %60 = vector.multi_reduction <maximumf>, %59, %cst_32 [1] : vector<16x16xf32> to vector<16xf32>
    %61 = vector.shape_cast %60 : vector<16xf32> to vector<16x1xf32>
    %62 = vector.broadcast %61 : vector<16x1xf32> to vector<16x16xf32>
    %63 = arith.subf %59, %62 : vector<16x16xf32>
    %64 = math.exp %63 : vector<16x16xf32>
    %cst_33 = arith.constant dense<0.000000e+00> : vector<16xf32>
    %65 = vector.multi_reduction <add>, %64, %cst_33 [1] : vector<16x16xf32> to vector<16xf32>
    %66 = vector.shape_cast %65 : vector<16xf32> to vector<16x1xf32>
    %67 = tpu.reciprocal %66 {approx = true} : vector<16x1xf32> -> vector<16x1xf32>
    %68 = vector.broadcast %67 : vector<16x1xf32> to vector<16x16xf32>
    %69 = arith.mulf %64, %68 : vector<16x16xf32>
    %70 = arith.truncf %69 : vector<16x16xf32> to vector<16x16xbf16>
    %cst_34 = arith.constant dense<0.000000e+00> : vector<16x64xf32>
    %71 = tpu.matmul %70, %55, %cst_34 {dimension_numbers = #tpu.dot_dimension_numbers<[1], [0], [0], [1], [0, 0, 1, 1], [], []>} : vector<16x16xbf16>, vector<16x64xbf16>, vector<16x64xf32> -> vector<16x64xf32>
    %72 = vector.extract_strided_slice %46 {offsets = [0, 64], sizes = [16, 64], strides = [1, 1]} : vector<16x128xf32> to vector<16x64xf32>
    %73 = arith.truncf %72 : vector<16x64xf32> to vector<16x64xbf16>
    %74 = vector.extract_strided_slice %47 {offsets = [0, 64], sizes = [16, 64], strides = [1, 1]} : vector<16x128xf32> to vector<16x64xf32>
    %75 = arith.truncf %74 : vector<16x64xf32> to vector<16x64xbf16>
    %76 = vector.extract_strided_slice %48 {offsets = [0, 64], sizes = [16, 64], strides = [1, 1]} : vector<16x128xf32> to vector<16x64xf32>
    %77 = arith.truncf %76 : vector<16x64xf32> to vector<16x64xbf16>
    %cst_35 = arith.constant dense<0.000000e+00> : vector<16x16xf32>
    %78 = tpu.matmul %73, %75, %cst_35 {dimension_numbers = #tpu.dot_dimension_numbers<[1], [1], [0], [0], [0, 0, 1, 0], [], []>} : vector<16x64xbf16>, vector<16x64xbf16>, vector<16x16xf32> -> vector<16x16xf32>
    %cst_36 = arith.constant 1.250000e-01 : f32
    %79 = vector.broadcast %cst_36 : f32 to vector<16x16xf32>
    %80 = arith.mulf %78, %79 : vector<16x16xf32>
    %81 = arith.addf %80, %49 : vector<16x16xf32>
    %cst_37 = arith.constant dense<0xFF800000> : vector<16xf32>
    %82 = vector.multi_reduction <maximumf>, %81, %cst_37 [1] : vector<16x16xf32> to vector<16xf32>
    %83 = vector.shape_cast %82 : vector<16xf32> to vector<16x1xf32>
    %84 = vector.broadcast %83 : vector<16x1xf32> to vector<16x16xf32>
    %85 = arith.subf %81, %84 : vector<16x16xf32>
    %86 = math.exp %85 : vector<16x16xf32>
    %cst_38 = arith.constant dense<0.000000e+00> : vector<16xf32>
    %87 = vector.multi_reduction <add>, %86, %cst_38 [1] : vector<16x16xf32> to vector<16xf32>
    %88 = vector.shape_cast %87 : vector<16xf32> to vector<16x1xf32>
    %89 = tpu.reciprocal %88 {approx = true} : vector<16x1xf32> -> vector<16x1xf32>
    %90 = vector.broadcast %89 : vector<16x1xf32> to vector<16x16xf32>
    %91 = arith.mulf %86, %90 : vector<16x16xf32>
    %92 = arith.truncf %91 : vector<16x16xf32> to vector<16x16xbf16>
    %cst_39 = arith.constant dense<0.000000e+00> : vector<16x64xf32>
    %93 = tpu.matmul %92, %77, %cst_39 {dimension_numbers = #tpu.dot_dimension_numbers<[1], [0], [0], [1], [0, 0, 1, 1], [], []>} : vector<16x16xbf16>, vector<16x64xbf16>, vector<16x64xf32> -> vector<16x64xf32>
    %94 = tpu.concatenate %71, %93 in 1 : vector<16x64xf32>, vector<16x64xf32> -> vector<16x128xf32>
    %95 = arith.truncf %94 : vector<16x128xf32> to vector<16x128xbf16>
    %cst_40 = arith.constant dense<0.000000e+00> : vector<16x128xf32>
    %96 = tpu.matmul %95, %12, %cst_40 {dimension_numbers = #tpu.dot_dimension_numbers<[1], [0], [0], [1], [0, 0, 1, 1], [], []>} : vector<16x128xbf16>, vector<128x128xbf16>, vector<16x128xf32> -> vector<16x128xf32>
    %97 = vector.broadcast %3 : vector<1x128xf32> to vector<16x128xf32>
    %98 = arith.addf %96, %97 : vector<16x128xf32>
    %99 = arith.addf %19, %98 : vector<16x128xf32>
    %cst_41 = arith.constant dense<0.000000e+00> : vector<16xf32>
    %100 = vector.multi_reduction <add>, %99, %cst_41 [1] : vector<16x128xf32> to vector<16xf32>
    %101 = vector.shape_cast %100 : vector<16xf32> to vector<16x1xf32>
    %cst_42 = arith.constant 1.280000e+02 : f32
    %102 = vector.broadcast %cst_42 : f32 to vector<16x1xf32>
    %103 = arith.divf %101, %102 : vector<16x1xf32>
    %104 = arith.mulf %99, %99 : vector<16x128xf32>
    %cst_43 = arith.constant dense<0.000000e+00> : vector<16xf32>
    %105 = vector.multi_reduction <add>, %104, %cst_43 [1] : vector<16x128xf32> to vector<16xf32>
    %106 = vector.shape_cast %105 : vector<16xf32> to vector<16x1xf32>
    %cst_44 = arith.constant 1.280000e+02 : f32
    %107 = vector.broadcast %cst_44 : f32 to vector<16x1xf32>
    %108 = arith.divf %106, %107 : vector<16x1xf32>
    %109 = arith.mulf %103, %103 : vector<16x1xf32>
    %110 = arith.subf %108, %109 : vector<16x1xf32>
    %111 = vector.broadcast %103 : vector<16x1xf32> to vector<16x128xf32>
    %112 = arith.subf %99, %111 : vector<16x128xf32>
    %cst_45 = arith.constant 9.99999997E-7 : f32
    %113 = vector.broadcast %cst_45 : f32 to vector<16x1xf32>
    %114 = arith.addf %110, %113 : vector<16x1xf32>
    %115 = math.rsqrt %114 : vector<16x1xf32>
    %116 = vector.broadcast %115 : vector<16x1xf32> to vector<16x128xf32>
    %117 = arith.mulf %112, %116 : vector<16x128xf32>
    %118 = vector.broadcast %4 : vector<1x128xf32> to vector<16x128xf32>
    %119 = arith.mulf %117, %118 : vector<16x128xf32>
    %120 = vector.broadcast %5 : vector<1x128xf32> to vector<16x128xf32>
    %121 = arith.addf %119, %120 : vector<16x128xf32>
    %122 = arith.truncf %121 : vector<16x128xf32> to vector<16x128xbf16>
    %cst_46 = arith.constant dense<0.000000e+00> : vector<16x512xf32>
    %123 = tpu.matmul %122, %13, %cst_46 {dimension_numbers = #tpu.dot_dimension_numbers<[1], [0], [0], [1], [0, 0, 1, 1], [], []>} : vector<16x128xbf16>, vector<128x512xbf16>, vector<16x512xf32> -> vector<16x512xf32>
    %124 = vector.broadcast %6 : vector<1x512xf32> to vector<16x512xf32>
    %125 = arith.addf %123, %124 : vector<16x512xf32>
    %cst_47 = arith.constant 5.000000e-01 : f32
    %126 = vector.broadcast %cst_47 : f32 to vector<16x512xf32>
    %127 = arith.mulf %126, %125 : vector<16x512xf32>
    %cst_48 = arith.constant 4.471500e-02 : f32
    %128 = vector.broadcast %cst_48 : f32 to vector<16x512xf32>
    %129 = arith.mulf %128, %125 : vector<16x512xf32>
    %130 = arith.mulf %129, %125 : vector<16x512xf32>
    %131 = arith.mulf %130, %125 : vector<16x512xf32>
    %132 = arith.addf %125, %131 : vector<16x512xf32>
    %cst_49 = arith.constant 0.797884583 : f32
    %133 = vector.broadcast %cst_49 : f32 to vector<16x512xf32>
    %134 = arith.mulf %133, %132 : vector<16x512xf32>
    %135 = math.tanh %134 : vector<16x512xf32>
    %cst_50 = arith.constant 1.000000e+00 : f32
    %136 = vector.broadcast %cst_50 : f32 to vector<16x512xf32>
    %137 = arith.addf %136, %135 : vector<16x512xf32>
    %138 = arith.mulf %127, %137 : vector<16x512xf32>
    %139 = arith.truncf %138 : vector<16x512xf32> to vector<16x512xbf16>
    %c0_51 = arith.constant 0 : index
    %c0_52 = arith.constant 0 : index
    %140 = vector.load %arg5[%c0_51, %c0_52] : memref<512x128xbf16, #tpu.memory_space<vmem>>, vector<512x128xbf16>
    %cst_53 = arith.constant dense<0.000000e+00> : vector<16x128xf32>
    %141 = tpu.matmul %139, %140, %cst_53 {dimension_numbers = #tpu.dot_dimension_numbers<[1], [0], [0], [1], [0, 0, 1, 1], [], []>} : vector<16x512xbf16>, vector<512x128xbf16>, vector<16x128xf32> -> vector<16x128xf32>
    %142 = vector.broadcast %7 : vector<1x128xf32> to vector<16x128xf32>
    %143 = arith.addf %141, %142 : vector<16x128xf32>
    %144 = arith.addf %99, %143 : vector<16x128xf32>
    %cst_54 = arith.constant dense<0.000000e+00> : vector<16xf32>
    %145 = vector.multi_reduction <add>, %144, %cst_54 [1] : vector<16x128xf32> to vector<16xf32>
    %146 = vector.shape_cast %145 : vector<16xf32> to vector<16x1xf32>
    %cst_55 = arith.constant 1.280000e+02 : f32
    %147 = vector.broadcast %cst_55 : f32 to vector<16x1xf32>
    %148 = arith.divf %146, %147 : vector<16x1xf32>
    %149 = arith.mulf %144, %144 : vector<16x128xf32>
    %cst_56 = arith.constant dense<0.000000e+00> : vector<16xf32>
    %150 = vector.multi_reduction <add>, %149, %cst_56 [1] : vector<16x128xf32> to vector<16xf32>
    %151 = vector.shape_cast %150 : vector<16xf32> to vector<16x1xf32>
    %cst_57 = arith.constant 1.280000e+02 : f32
    %152 = vector.broadcast %cst_57 : f32 to vector<16x1xf32>
    %153 = arith.divf %151, %152 : vector<16x1xf32>
    %154 = arith.mulf %148, %148 : vector<16x1xf32>
    %155 = arith.subf %153, %154 : vector<16x1xf32>
    %156 = vector.broadcast %148 : vector<16x1xf32> to vector<16x128xf32>
    %157 = arith.subf %144, %156 : vector<16x128xf32>
    %cst_58 = arith.constant 9.99999997E-7 : f32
    %158 = vector.broadcast %cst_58 : f32 to vector<16x1xf32>
    %159 = arith.addf %155, %158 : vector<16x1xf32>
    %160 = math.rsqrt %159 : vector<16x1xf32>
    %161 = vector.broadcast %160 : vector<16x1xf32> to vector<16x128xf32>
    %162 = arith.mulf %157, %161 : vector<16x128xf32>
    %163 = vector.broadcast %8 : vector<1x128xf32> to vector<16x128xf32>
    %164 = arith.mulf %162, %163 : vector<16x128xf32>
    %165 = vector.broadcast %9 : vector<1x128xf32> to vector<16x128xf32>
    %166 = arith.addf %164, %165 : vector<16x128xf32>
    %167 = arith.truncf %166 : vector<16x128xf32> to vector<16x128xbf16>
    %cst_59 = arith.constant dense<0.000000e+00> : vector<16x128xf32>
    %168 = tpu.matmul %167, %14, %cst_59 {dimension_numbers = #tpu.dot_dimension_numbers<[1], [0], [0], [1], [0, 0, 1, 1], [], []>} : vector<16x128xbf16>, vector<128x128xbf16>, vector<16x128xf32> -> vector<16x128xf32>
    %169 = vector.broadcast %10 : vector<1x128xf32> to vector<16x128xf32>
    %170 = arith.addf %168, %169 : vector<16x128xf32>
    %c0_60 = arith.constant 0 : index
    %c0_61 = arith.constant 0 : index
    %171 = vector.load %arg7[%c0_60, %c0_61] : memref<16x128xf32, #tpu.memory_space<vmem>>, vector<16x128xf32>
    tpu.vector_store %arg7[%c0_60, %c0_61], %170 {strides = array<i32>} : memref<16x128xf32, #tpu.memory_space<vmem>>, vector<16x128xf32>,
    return
  }
}

</mosaic_0001>

<bundles_post_ra>
// kernel: _vit_forward.1
= control target key start
LH: loop header
LB: loop body
LE: loop exit
PB: predicated region body
PF: predicated region fallthrough
CT: control target
= control target key end

     0   :  { %12 = vsyncpa [#allocation3], 0  ;;  %s2850_s0 = inlined_call_operand.vmem [shape: bf16[16,256], index: 0, kind: input, shape index: {}]   ;;  %s2851_s1 = inlined_call_operand.hbm [shape: bf16[256,128], index: 1, kind: input, shape index: {}]   ;;  %s2852_s2 = inlined_call_operand.vmem [shape: f32[16,128], index: 2, kind: input, shape index: {}]   ;;  %s2853_s3 = inlined_call_operand.vmem [shape: f32[16,16], index: 3, kind: input, shape index: {}]   ;;  %s2854_s4 = inlined_call_operand.vmem [shape: bf16[128,1152], index: 4, kind: input, shape index: {}]   ;;  %s2855_s5 = inlined_call_operand.hbm [shape: bf16[512,128], index: 5, kind: input, shape index: {}]   ;;  %s2856_s6 = inlined_call_operand.hbm [shape: f32[16,512], index: 6, kind: input, shape index: {}]   ;;  %s2857_s7 = inlined_call_operand.vmem [shape: f32[16,128], index: 7, kind: output, shape index: {}]  }
   0x1   :  { %13 = vsyncpa [#allocation5], 0  ;;  %s2398_s24 = smov [#allocation4]   ;;  %s2399_s26 = smov [#allocation2]  }
   0x2   :  { %s39_s25 = sshll.u32 %s2398_s24, 4  ;;  %s21_s27 = sshll.u32 %s2399_s26, 4  ;;  %s40_s25 = int_to_ptr.vmem [resolvable:$true] %s39_s25  ;;  %s22_s27 = int_to_ptr.vmem [resolvable:$true] %s21_s27 }
   0x3   :  { %s2342_s28 = scalar_lea.vmem %s40_s25, 4096  ;;  %p2347_p1 = scmp.lt.s32.totalorder %s40_s25, %s40_s25 }
   0x4   :  { %p2343_p0 = scmp.ne.s32.totalorder %s40_s25, %s2342_s28  ;;  %p2348_p2 = scmp.lt.s32.totalorder %s2342_s28, %s2342_s28 }
   0x6   :  { %p2349_p3 = por %p2348_p2, %p2347_p1 }
   0x8   :  { %p2350_p4 = pnand %p2349_p3, %p2343_p0 }
   0xa   :  { %2353 = shalt.err (!%p2350_p4)
}
   0xb   :  { %s2400_s29 = smov 64   ;;  %s2401_s30 = smov 4  }
   0xc   :  { %45 = dma.hbm_to_vmem [thread:$0]  %s2855_s5, 4096, %s40_s25, [#allocation5], %s2400_s29, %s2400_s29, %s2401_s30  }
   0xd   :  { %s2362_s10 = scalar_lea.vmem %s22_s27, 2048  ;;  %p2367_p6 = scmp.lt.s32.totalorder %s22_s27, %s22_s27 }
   0xe   :  { %p2363_p5 = scmp.ne.s32.totalorder %s22_s27, %s2362_s10  ;;  %p2368_p7 = scmp.lt.s32.totalorder %s2362_s10, %s2362_s10 }
  0x10   :  { %p2369_p8 = por %p2368_p7, %p2367_p6 }
  0x12   :  { %p2370_p9 = pnand %p2369_p8, %p2363_p5 }
  0x14   :  { %2373 = shalt.err (!%p2370_p9)
}
  0x15   :  { %27 = dma.hbm_to_vmem [thread:$0]  %s2851_s1, 2048, %s22_s27, [#allocation3], %s2400_s29, %s2400_s29, %s2401_s30  }
  0x16   :  { %s2402_s13 = smov [#allocation6]  }
  0x17   :  { %s51_s14 = sshll.u32 %s2402_s13, 4  ;;  %s52_s14 = int_to_ptr.vmem [resolvable:$true] %s51_s14 }
  0x18   :  { %s2382_s15 = scalar_lea.vmem %s52_s14, 1024  ;;  %p2387_p11 = scmp.lt.s32.totalorder %s52_s14, %s52_s14 }
  0x19   :  { %p2383_p10 = scmp.ne.s32.totalorder %s52_s14, %s2382_s15  ;;  %p2388_p12 = scmp.lt.s32.totalorder %s2382_s15, %s2382_s15 }
  0x1b   :  { %p2389_p13 = por %p2388_p12, %p2387_p11 }
  0x1d   :  { %p2390_p0 = pnand %p2389_p13, %p2383_p10 }
  0x1f   :  { %2393 = shalt.err (!%p2390_p0)
}
  0x20   :  { %s2403_s5 = smov 512   ;;  %s2404_s16 = smov 32  }
  0x21   :  { %57 = dma.hbm_to_vmem [thread:$0]  %s2856_s6, 1024, %s52_s14, [#allocation5], %s2403_s5, %s2403_s5, %s2404_s16  }
  0x22   :  { %2394 = dma.done.wait [#allocation3], 2048  }
  0x23   :  { %2395 = vsyncadd [#allocation3], 4294965248 }
  0x24   :  { %2396 = dma.done.wait [#allocation5], 5120  }
  0x25   :  { %2397 = vsyncadd [#allocation5], 4294962176  ;;  %v2143_v0 = vld [vmem:[#allocation2 + $0x78] sm:$0xff]   ;;  %v2145_v2 = vld [vmem:[#allocation2 + $0x70] sm:$0xff]   ;;  %v2405_v33 = vmov 0.0   ;;  %v2406_v47 = vmov 0  }
  0x26   :  { %v2144_v1 = vld [vmem:[#allocation2 + $0x38] sm:$0xff]   ;;  %1943 = vmatprep.subr.bf16.mxu0 %v2143_v0  ;;  %v2146_v3 = vld [vmem:[#allocation2 + $0x30] sm:$0xff]   ;;  %v2147_v4 = vld [vmem:[#allocation2 + $0x68] sm:$0xff]   ;;  %568 = vmatprep.mubr.bf16.mxu1 %v2406_v47  ;;  %vm2407_vm0 = vmmov 0   ;;  %vm625_vm1 = vcmask 523264   ;;  %vm677_vm2 = vcmask 130048  }
  0x27   :  { %1944 = vmatpush3.bf16.msra.mxu0 %v2144_v1  ;;  %v2148_v5 = vld [vmem:[#allocation2 + $0x28] sm:$0xff]   ;;  %v2149_v6 = vld [vmem:[#allocation2 + $0x60] sm:$0xff]   ;;  %v2151_v8 = vld [vmem:[#allocation2 + $0x58] sm:$0xff]  }
  0x28   :  { %1945 = vmatprep.subr.bf16.mxu0 %v2145_v2  ;;  %v2150_v7 = vld [vmem:[#allocation2 + $0x20] sm:$0xff]   ;;  %v2152_v9 = vld [vmem:[#allocation2 + $0x18] sm:$0xff]   ;;  %v2153_v10 = vld [vmem:[#allocation2 + $0x50] sm:$0xff]  }
  0x29   :  { %v2154_v11 = vld [vmem:[#allocation2 + $0x10] sm:$0xff]   ;;  %v2161_v12 = vld [vmem:[%s2850_s0 + $0x4] ss:$8 sps:$4 sm:$0xff]   ;;  %v2159_v17 = vld [vmem:[%s2850_s0] ss:$8 sps:$4 sm:$0xff]  }
  0x2a   :  { %v2155_v13 = vld [vmem:[#allocation2 + $0x48] sm:$0xff]   ;;  %351 = vmatprep.mubr.bf16.mxu0 %v2161_v12  ;;  %v2157_v15 = vld [vmem:[#allocation2 + $0x40] sm:$0xff]   ;;  %v2164_v31 = vld [vmem:[%s2854_s4 + $0x1f8] ss:$36 sps:$4 sm:$0xff]  }
  0x2b   :  { %1946 = vmatpush3.bf16.msra.mxu0 %v2146_v3  ;;  %v2156_v14 = vld [vmem:[#allocation2 + $0x8] sm:$0xff]   ;;  %v2158_v16 = vld [vmem:[#allocation2] sm:$0xff]   ;;  %v2166_v34 = vld [vmem:[%s2854_s4 + $0x1b4] ss:$36 sps:$4 sm:$0xff]  }
  0x2c   :  { %1947 = vmatprep.subr.bf16.mxu0 %v2147_v4  ;;  %v211_v19 = vld [vmem:[%s2852_s2] sm:$0xff]  ;;  %v212_v24 = vld [vmem:[%s2852_s2 + $0x8] sm:$0xff]  ;;  %v2168_v35 = vld [vmem:[%s2854_s4 + $0x1b0] ss:$36 sps:$4 sm:$0xff]  }
  0x2d   :  { %v2162_v30 = vld [vmem:[%s2854_s4 + $0x1fc] ss:$36 sps:$4 sm:$0xff]   ;;  %v2170_v37 = vld [vmem:[%s2854_s4 + $0x16c] ss:$36 sps:$4 sm:$0xff]   ;;  %v2174_v40 = vld [vmem:[%s2854_s4 + $0x124] ss:$36 sps:$4 sm:$0xff]  }
  0x2e   :  { %v2165_v32 = vld [vmem:[%s2854_s4 + $0x200] ss:$36 sps:$4 sm:$0xff]   ;;  %536 = vmatprep.subr.bf16.mxu1 %v2162_v30  ;;  %v2169_v36 = vld [vmem:[%s2854_s4 + $0x1b8] ss:$36 sps:$4 sm:$0xff]   ;;  %v2172_v38 = vld [vmem:[%s2854_s4 + $0x168] ss:$36 sps:$4 sm:$0xff]  }
  0x2f   :  { %1948 = vmatpush3.bf16.msra.mxu0 %v2148_v5  ;;  %537 = vmatpush1.bf16.msra.mxu1 %v2164_v31  ;;  %v2173_v39 = vld [vmem:[%s2854_s4 + $0x170] ss:$36 sps:$4 sm:$0xff]   ;;  %v2176_v41 = vld [vmem:[%s2854_s4 + $0x120] ss:$36 sps:$4 sm:$0xff]   ;;  %v2177_v42 = vld [vmem:[%s2854_s4 + $0x128] ss:$36 sps:$4 sm:$0xff]  }
  0x30   :  { %1949 = vmatprep.subr.bf16.mxu0 %v2149_v6  ;;  %538 = vmatprep.subr.bf16.mxu1 %v2166_v34  ;;  %v2178_v43 = vld [vmem:[%s2854_s4 + $0xdc] ss:$36 sps:$4 sm:$0xff]   ;;  %v2182_v46 = vld [vmem:[%s2854_s4 + $0x94] ss:$36 sps:$4 sm:$0xff]   ;;  %v2186_v50 = vld [vmem:[%s2854_s4 + $0x4c] ss:$36 sps:$4 sm:$0xff]  }
  0x31   :  { %v2180_v44 = vld [vmem:[%s2854_s4 + $0xd8] ss:$36 sps:$4 sm:$0xff]   ;;  %v2181_v45 = vld [vmem:[%s2854_s4 + $0xe0] ss:$36 sps:$4 sm:$0xff]   ;;  %v2184_v48 = vld [vmem:[%s2854_s4 + $0x90] ss:$36 sps:$4 sm:$0xff]  }
  0x32   :  { %v2185_v49 = vld [vmem:[%s2854_s4 + $0x98] ss:$36 sps:$4 sm:$0xff]   ;;  %v2188_v51 = vld [vmem:[%s2854_s4 + $0x48] ss:$36 sps:$4 sm:$0xff]   ;;  %v2189_v52 = vld [vmem:[%s2854_s4 + $0x50] ss:$36 sps:$4 sm:$0xff]  }
  0x33   :  { %1950 = vmatpush3.bf16.msra.mxu0 %v2150_v7  ;;  %539 = vmatpush1.bf16.msra.mxu1 %v2168_v35  ;;  %v2190_v53 = vld [vmem:[%s2854_s4 + $0x4] ss:$36 sps:$4 sm:$0xff]  }
  0x34   :  { %1951 = vmatprep.subr.bf16.mxu0 %v2151_v8  ;;  %540 = vmatprep.subr.bf16.mxu1 %v2170_v37  ;;  %v2192_v54 = vld [vmem:[%s2854_s4] ss:$36 sps:$4 sm:$0xff]   ;;  %v2193_v55 = vld [vmem:[%s2854_s4 + $0x8] ss:$36 sps:$4 sm:$0xff]  }
  0x37   :  { %1952 = vmatpush3.bf16.msra.mxu0 %v2152_v9  ;;  %541 = vmatpush1.bf16.msra.mxu1 %v2172_v38  ;;  %v68_v9 = vld [vmem:[#allocation6] ss:$0 sm:$0xff] }
  0x38   :  { %1953 = vmatprep.subr.bf16.mxu0 %v2153_v10  ;;  %542 = vmatprep.subr.bf16.mxu1 %v2174_v40 }
  0x3b   :  { %1954 = vmatpush3.bf16.msra.mxu0 %v2154_v11  ;;  %543 = vmatpush1.bf16.msra.mxu1 %v2176_v41 }
  0x3c   :  { %1955 = vmatprep.subr.bf16.mxu0 %v2155_v13  ;;  %544 = vmatprep.subr.bf16.mxu1 %v2178_v43 }
  0x3f   :  { %1956 = vmatpush3.bf16.msra.mxu0 %v2156_v14  ;;  %545 = vmatpush1.bf16.msra.mxu1 %v2180_v44  ;;  %v69_v14 = vld [vmem:[#allocation6 + $0x1] ss:$0 sm:$0xff] }
  0x40   :  { %1957 = vmatprep.subr.bf16.mxu0 %v2157_v15  ;;  %546 = vmatprep.subr.bf16.mxu1 %v2182_v46 }
  0x43   :  { %1958 = vmatpush3.bf16.msra.mxu0 %v2158_v16  ;;  %547 = vmatpush1.bf16.msra.mxu1 %v2184_v48 }
  0x44   :  { %2044 = vmatprep.subr.bf16.mxu0 %v2405_v33  ;;  %548 = vmatprep.subr.bf16.mxu1 %v2186_v50 }
  0x46   :  { %352 = vmatmul.mubr.bf16.vlgmr.msra.gmra.mxu0 %v2159_v17 }
  0x47   :  { %2045 = vmatpush3.bf16.msra.mxu0 %v2165_v32  ;;  %2060 = vmatprep.mubr.msk.bf16.mxu0 %vm2407_vm0, %v2405_v33 }
  0x48   :  { %2046 = vmatprep.subr.bf16.mxu0 %v2405_v33  ;;  %549 = vmatpush1.bf16.msra.mxu1 %v2188_v51  ;;  %v620_v51 = vld [vmem:[%s2853_s3] sm:$0xff] }
  0x49   :  { %550 = vmatprep.subr.bf16.mxu1 %v2190_v53 }
  0x4b   :  { %2047 = vmatpush3.bf16.msra.mxu0 %v2169_v36 }
  0x4c   :  { %2048 = vmatprep.subr.bf16.mxu0 %v2405_v33  ;;  %551 = vmatpush1.bf16.msra.mxu1 %v2192_v54 }
  0x4d   :  { %2064 = vmatprep.subr.bf16.mxu1 %v2405_v33 }
  0x4f   :  { %2049 = vmatpush3.bf16.msra.mxu0 %v2173_v39 }
  0x50   :  { %2050 = vmatprep.subr.bf16.mxu0 %v2405_v33 }
  0x53   :  { %2051 = vmatpush3.bf16.msra.mxu0 %v2177_v42 }
  0x54   :  { %2052 = vmatprep.subr.bf16.mxu0 %v2405_v33 }
  0x57   :  { %2053 = vmatpush3.bf16.msra.mxu0 %v2181_v45 }
  0x58   :  { %2054 = vmatprep.subr.bf16.mxu0 %v2405_v33 }
  0x5b   :  { %2055 = vmatpush3.bf16.msra.mxu0 %v2185_v49 }
  0x5c   :  { %2056 = vmatprep.subr.bf16.mxu0 %v2405_v33 }
  0x5f   :  { %2057 = vmatpush3.bf16.msra.mxu0 %v2189_v52 }
  0x60   :  { %2058 = vmatprep.subr.bf16.mxu0 %v2405_v33 }
  0x63   :  { %2059 = vmatpush3.bf16.msra.mxu0 %v2193_v55 }
  0x64   :  { %2088 = vmatprep.subr.bf16.mxu0 %v2405_v33 }
 0x106   :  { %v1959_v18 = vpop.f32.mrf.mxu0 }
 0x108   :  { %v1960_v20 = vpop.f32.mrf.mxu0 }
 0x109   :  { %v1961_v21 = vadd.f32 %v1960_v20, %v1959_v18 }
 0x10a   :  { %v1962_v22 = vpop.f32.mrf.mxu0 }
 0x10b   :  { %v2470_v23 = vadd.f32 %v1961_v21, %v211_v19  ;;  %v393_v19 = vlaneseq }
 0x10c   :  { %v1963_v25 = vpop.f32.mrf.mxu0 }
 0x10d   :  { %v1964_v26 = vadd.f32 %v1963_v25, %v1962_v22  ;;  %360 = vadd.xlane.f32.xlu0 %v2470_v23  ;;  %v367_v27 = vmul.f32 %v2470_v23, %v2470_v23  ;;  %v2574_v20 = vshrl.u32 %v393_v19, 7  ;;  %v71_v25 = vld [vmem:[#allocation6 + $0x2] ss:$8 sm:$0x7] }
 0x10f   :  { %v2478_v28 = vadd.f32 %v1964_v26, %v212_v24  ;;  %369 = vadd.xlane.f32.xlu1 %v367_v27  ;;  %v399_v21 = vsub.s32 1, %v2574_v20  ;;  %v395_v35 = vsub.s32 0, %v2574_v20  ;;  %v403_v38 = vsub.s32 2, %v2574_v20 }
 0x111   :  { %362 = vadd.xlane.f32.xlu0 %v2478_v28  ;;  %v368_v29 = vmul.f32 %v2478_v28, %v2478_v28  ;;  %v396_v40 = vrot.slane %v71_v25, %v395_v35  ;;  %v404_v42 = vrot.slane %v71_v25, %v403_v38 }
 0x113   :  { %371 = vadd.xlane.f32.xlu1 %v368_v29  ;;  %v400_v29 = vrot.slane %v71_v25, %v399_v21 }
 0x196   :  { %v361_v56 = vpop.xlane.xlu0 %360 }
 0x197   :  { %v365_v57 = vmul.f32 0.0078125, %v361_v56  ;;  %v621_v56 = vld [vmem:[%s2853_s3 + $0x8] sm:$0xff] }
 0x198   :  { %v370_v58 = vpop.xlane.xlu1 %369 }
 0x199   :  { %v375_v59 = vmul.f32 %v365_v57, %v365_v57  ;;  %v373_v60 = vmul.f32 0.0078125, %v370_v58  ;;  %v379_v6 = vsub.f32 %v2470_v23, %v365_v57 }
 0x19a   :  { %v363_v61 = vpop.xlane.xlu0 %362 }
 0x19b   :  { %v377_v62 = vsub.f32 %v373_v60, %v375_v59  ;;  %v366_v63 = vmul.f32 0.0078125, %v363_v61 }
 0x19c   :  { %v372_v0 = vpop.xlane.xlu1 %371 }
 0x19d   :  { %v381_v1 = vadd.f32 1e-06, %v377_v62  ;;  %v376_v2 = vmul.f32 %v366_v63, %v366_v63  ;;  %v374_v3 = vmul.f32 0.0078125, %v372_v0  ;;  %v380_v10 = vsub.f32 %v2478_v28, %v366_v63 }
 0x19f   :  { %2290 = vrsqrt.f32 %v381_v1  ;;  %v378_v4 = vsub.f32 %v374_v3, %v376_v2 }
 0x1a1   :  { %v382_v5 = vadd.f32 1e-06, %v378_v4 }
 0x1a3   :  { %2292 = vrsqrt.f32 %v382_v5 }
 0x1ac   :  { %v2291_v7 = vpop.eup %2290 }
 0x1ad   :  { %v385_v8 = vmul.f32 %v2291_v7, %v379_v6 }
 0x1af   :  { %v387_v13 = vmul.f32 %v385_v8, %v68_v9 }
 0x1b0   :  { %v2293_v11 = vpop.eup %2292 }
 0x1b1   :  { %v386_v12 = vmul.f32 %v2293_v11, %v380_v10  ;;  %v389_v16 = vadd.f32 %v387_v13, %v69_v14 }
 0x1b3   :  { %v388_v15 = vmul.f32 %v386_v12, %v68_v9 }
 0x1b5   :  { %v390_v17 = vadd.f32 %v388_v15, %v69_v14 }
 0x1b7   :  { %v391_v18 = vpack.c.bf16 %v390_v17, %v389_v16 }
 0x1b9   :  { %569 = vmatmul.mubr.bf16.vlgmr.msra.gmra.mxu1 %v391_v18  ;;  %2061 = vmatmul.mubr.bf16.vlgmr.msra.gmra.mxu0 %v391_v18 }
 0x1ba   :  { %2066 = vmatprep.mubr.msk.bf16.mxu1 %vm2407_vm0, %v2405_v33  ;;  %2104 = vmatprep.mubr.msk.bf16.mxu0 %vm2407_vm0, %v2405_v33 }
 0x279   :  { %v570_v22 = vpop.f32.mrf.mxu1  ;;  %v613_v24 = vpop.f32.mrf.mxu0 }
 0x27a   :  { %v571_v45 = vadd.f32 %v570_v22, %v396_v40  ;;  %v614_v46 = vadd.f32 %v613_v24, %v404_v42 }
 0x27b   :  { %v572_v26 = vpop.f32.mrf.mxu1  ;;  %v2062_v27 = vpop.f32.mrf.mxu0 }
 0x27c   :  { %v573_v36 = vadd.f32 %v572_v26, %v400_v29 }
 0x27d   :  { %v574_v30 = vpop.f32.mrf.mxu1  ;;  %v616_v31 = vpop.f32.mrf.mxu0 }
 0x27e   :  { %v575_v43 = vadd.f32 %v574_v30, %v396_v40  ;;  %v617_v44 = vadd.f32 %v616_v31, %v404_v42 }
 0x27f   :  { %v576_v32 = vpop.f32.mrf.mxu1  ;;  %v2063_v34 = vpop.f32.mrf.mxu0 }
 0x280   :  { %v577_v37 = vadd.f32 %v576_v32, %v400_v29  ;;  %v622_v48 = vpack.c.bf16 %v575_v43, %v571_v45  ;;  %v2587_v49 = vpack.c.bf16 %v617_v44, %v614_v46 }
 0x282   :  { %v623_v39 = vpack.c.bf16 %v577_v37, %v573_v36 }
 0x284   :  { %v630_v41 = vsel %vm625_vm1, %v623_v39, 0 }
 0x285   :  { %2065 = vmatpush3.bf16.xpose.msra.mxu1 %v630_v41 }
 0x286   :  { %2070 = vmatprep.subr.bf16.mxu1 %v2405_v33 }
 0x28c   :  { %2067 = vmatmul.mubr.msk.bf16.vlgmr.msra.gmra.mxu1 %vm625_vm1, %v622_v48 }
 0x28d   :  { %2071 = vmatpush3.bf16.msra.mxu1 %v2587_v49  ;;  %2072 = vmatprep.mubr.msk.bf16.mxu1 %vm2407_vm0, %v2405_v33 }
 0x28e   :  { %2076 = vmatprep.subr.bf16.mxu1 %v2405_v33 }
 0x34c   :  { %v666_v50 = vpop.f32.mrf.mxu1 }
 0x34d   :  { %v673_v52 = vmul.f32 0.125, %v666_v50 }
 0x34e   :  { %v2068_v53 = vpop.f32.mrf.mxu1 }
 0x34f   :  { %v675_v54 = vadd.f32 %v673_v52, %v620_v51 }
 0x350   :  { %v669_v55 = vpop.f32.mrf.mxu1 }
 0x351   :  { %v674_v57 = vmul.f32 0.125, %v669_v55  ;;  %v678_v58 = vsel %vm677_vm2, %v675_v54, -inf }
 0x352   :  { %679 = vmax.xlane.f32.xlu0 %v678_v58  ;;  %v2069_v59 = vpop.f32.mrf.mxu1 }
 0x353   :  { %v676_v60 = vadd.f32 %v674_v57, %v621_v56  ;;  %v2194_v59 = vld [vmem:[%s2854_s4 + $0x204] ss:$36 sps:$4 sm:$0xff]  }
 0x354   :  { %2089 = vmatpush3.bf16.msra.mxu0 %v2194_v59  ;;  %v2249_v59 = vld [vmem:[%s2854_s4 + $0x1c] ss:$36 sps:$4 sm:$0xff]  }
 0x355   :  { %v681_v61 = vsel %vm677_vm2, %v676_v60, -inf  ;;  %2090 = vmatprep.subr.bf16.mxu0 %v2405_v33 }
 0x356   :  { %682 = vmax.xlane.f32.xlu1 %v681_v61  ;;  %v2197_v61 = vld [vmem:[%s2854_s4 + $0x12c] ss:$36 sps:$4 sm:$0xff]  }
 0x3db   :  { %v680_v62 = vpop.xlane.xlu0 %679 }
 0x3dc   :  { %v684_v63 = vsub.f32 %v675_v54, %v680_v62  ;;  %v2198_v62 = vld [vmem:[%s2854_s4 + $0xe4] ss:$36 sps:$4 sm:$0xff]  }
 0x3de   :  { %v686_v0 = vmul.f32 1.442695, %v684_v63  ;;  %v2199_v63 = vld [vmem:[%s2854_s4 + $0x9c] ss:$36 sps:$4 sm:$0xff]  }
 0x3df   :  { %v683_v1 = vpop.xlane.xlu1 %682 }
 0x3e0   :  { %2294 = vpow2.f32 %v686_v0  ;;  %v685_v2 = vsub.f32 %v676_v60, %v683_v1  ;;  %v2196_v60 = vld [vmem:[%s2854_s4 + $0x174] ss:$36 sps:$4 sm:$0xff]   ;;  %v2201_v1 = vld [vmem:[%s2854_s4 + $0xc] ss:$36 sps:$4 sm:$0xff]  }
 0x3e1   :  { %v2200_v0 = vld [vmem:[%s2854_s4 + $0x54] ss:$36 sps:$4 sm:$0xff]  }
 0x3e2   :  { %v688_v3 = vmul.f32 1.442695, %v685_v2 }
 0x3e4   :  { %2296 = vpow2.f32 %v688_v3 }
 0x3ed   :  { %v2295_v4 = vpop.eup %2294 }
 0x3ee   :  { %v690_v5 = vsel %vm677_vm2, %v2295_v4, 0.0 }
 0x3ef   :  { %691 = vadd.xlane.f32.xlu0 %v690_v5 }
 0x3f1   :  { %v2297_v6 = vpop.eup %2296 }
 0x3f2   :  { %v693_v7 = vsel %vm677_vm2, %v2297_v6, 0.0 }
 0x3f3   :  { %694 = vadd.xlane.f32.xlu1 %v693_v7 }
 0x404   :  { %746 = vrot.lane.b32.xlu1 %v622_v48, %s2400_s29 }
 0x405   :  { %749 = vrot.lane.b32.xlu0 %v623_v39, %s2400_s29 }
 0x478   :  { %v692_v8 = vpop.xlane.xlu0 %691 }
 0x479   :  { %2298 = vrcp.f32 %v692_v8 }
 0x47c   :  { %v695_v9 = vpop.xlane.xlu1 %694  ;;  %v750_v14 = vpop.permute.xlu0 %749 }
 0x47d   :  { %2300 = vrcp.f32 %v695_v9  ;;  %v755_v16 = vsel %vm625_vm1, %v750_v14, 0 }
 0x480   :  { %v747_v17 = vpop.permute.xlu1 %746 }
 0x486   :  { %v2299_v10 = vpop.eup %2298 }
 0x487   :  { %v698_v12 = vmul.f32 %v2299_v10, %v2295_v4 }
 0x48a   :  { %v2301_v11 = vpop.eup %2300 }
 0x48b   :  { %v699_v13 = vmul.f32 %v2301_v11, %v2297_v6 }
 0x48d   :  { %v700_v15 = vpack.c.bf16 %v699_v13, %v698_v12  ;;  %v72_v13 = vld [vmem:[#allocation6 + $0x3] ss:$0 sm:$0xff] }
 0x48f   :  { %2073 = vmatmul.mubr.msk.bf16.vlgmr.msra.gmra.mxu1 %vm677_vm2, %v700_v15 }
 0x490   :  { %2077 = vmatpush3.bf16.xpose.msra.mxu1 %v755_v16  ;;  %2078 = vmatprep.mubr.msk.bf16.mxu1 %vm2407_vm0, %v2405_v33 }
 0x491   :  { %2082 = vmatprep.subr.bf16.mxu1 %v2405_v33 }
 0x497   :  { %2079 = vmatmul.mubr.msk.bf16.vlgmr.msra.gmra.mxu1 %vm625_vm1, %v747_v17 }
 0x498   :  { %2084 = vmatprep.mubr.msk.bf16.mxu1 %vm2407_vm0, %v2405_v33 }
 0x54f   :  { %v2614_v18 = vpop.f32.mrf.mxu1 }
 0x551   :  { %v2074_v19 = vpop.f32.mrf.mxu1 }
 0x553   :  { %v2616_v22 = vpop.f32.mrf.mxu1 }
 0x555   :  { %v2075_v24 = vpop.f32.mrf.mxu1 }
 0x557   :  { %v791_v25 = vpop.f32.mrf.mxu1 }
 0x558   :  { %v798_v26 = vmul.f32 0.125, %v791_v25 }
 0x559   :  { %v2080_v27 = vpop.f32.mrf.mxu1 }
 0x55a   :  { %v800_v29 = vadd.f32 %v798_v26, %v620_v51  ;;  %v2207_v26 = vld [vmem:[%s2854_s4 + $0x214] ss:$36 sps:$4 sm:$0xff]  }
 0x55b   :  { %v794_v30 = vpop.f32.mrf.mxu1  ;;  %v2205_v27 = vld [vmem:[%s2854_s4 + $0x210] ss:$36 sps:$4 sm:$0xff]  }
 0x55c   :  { %v799_v31 = vmul.f32 0.125, %v794_v30  ;;  %v802_v32 = vsel %vm677_vm2, %v800_v29, -inf  ;;  %v2213_v30 = vld [vmem:[%s2854_s4 + $0x1cc] ss:$36 sps:$4 sm:$0xff]  }
 0x55d   :  { %803 = vmax.xlane.f32.xlu1 %v802_v32  ;;  %v2081_v34 = vpop.f32.mrf.mxu1  ;;  %v2211_v32 = vld [vmem:[%s2854_s4 + $0x1c8] ss:$36 sps:$4 sm:$0xff]  }
 0x55e   :  { %v801_v36 = vadd.f32 %v799_v31, %v621_v56  ;;  %v2208_v31 = vld [vmem:[%s2854_s4 + $0x1c0] ss:$36 sps:$4 sm:$0xff]  }
 0x55f   :  { %v2216_v34 = vld [vmem:[%s2854_s4 + $0x17c] ss:$36 sps:$4 sm:$0xff]  }
 0x560   :  { %v805_v37 = vsel %vm677_vm2, %v801_v36, -inf }
 0x561   :  { %806 = vmax.xlane.f32.xlu0 %v805_v37  ;;  %v2214_v37 = vld [vmem:[%s2854_s4 + $0x178] ss:$36 sps:$4 sm:$0xff]  }
 0x5e6   :  { %v804_v39 = vpop.xlane.xlu1 %803 }
 0x5e7   :  { %v808_v40 = vsub.f32 %v800_v29, %v804_v39  ;;  %v2210_v29 = vld [vmem:[%s2854_s4 + $0x1c4] ss:$36 sps:$4 sm:$0xff]  }
 0x5e8   :  { %v2217_v39 = vld [vmem:[%s2854_s4 + $0x180] ss:$36 sps:$4 sm:$0xff]  }
 0x5e9   :  { %v810_v41 = vmul.f32 1.442695, %v808_v40  ;;  %v2220_v40 = vld [vmem:[%s2854_s4 + $0x130] ss:$36 sps:$4 sm:$0xff]  }
 0x5ea   :  { %v807_v42 = vpop.xlane.xlu0 %806 }
 0x5eb   :  { %2302 = vpow2.f32 %v810_v41  ;;  %v809_v43 = vsub.f32 %v801_v36, %v807_v42  ;;  %v2219_v36 = vld [vmem:[%s2854_s4 + $0x184] ss:$36 sps:$4 sm:$0xff]   ;;  %v2222_v41 = vld [vmem:[%s2854_s4 + $0x134] ss:$36 sps:$4 sm:$0xff]  }
 0x5ec   :  { %v2223_v42 = vld [vmem:[%s2854_s4 + $0x138] ss:$36 sps:$4 sm:$0xff]  }
 0x5ed   :  { %v812_v44 = vmul.f32 1.442695, %v809_v43  ;;  %v2225_v43 = vld [vmem:[%s2854_s4 + $0x13c] ss:$36 sps:$4 sm:$0xff]  }
 0x5ef   :  { %2304 = vpow2.f32 %v812_v44  ;;  %v2228_v44 = vld [vmem:[%s2854_s4 + $0xec] ss:$36 sps:$4 sm:$0xff]  }
 0x5f8   :  { %v2303_v45 = vpop.eup %2302 }
 0x5f9   :  { %v814_v46 = vsel %vm677_vm2, %v2303_v45, 0.0 }
 0x5fa   :  { %815 = vadd.xlane.f32.xlu0 %v814_v46  ;;  %v2226_v46 = vld [vmem:[%s2854_s4 + $0xe8] ss:$36 sps:$4 sm:$0xff]  }
 0x5fc   :  { %v2305_v48 = vpop.eup %2304 }
 0x5fd   :  { %v817_v50 = vsel %vm677_vm2, %v2305_v48, 0.0 }
 0x5fe   :  { %818 = vadd.xlane.f32.xlu1 %v817_v50  ;;  %v2234_v50 = vld [vmem:[%s2854_s4 + $0xa4] ss:$36 sps:$4 sm:$0xff]  }
 0x610   :  { %826 = vrot.lane.b32.xlu0 %v2587_v49, %s2400_s29  ;;  %v2195_v49 = vld [vmem:[%s2854_s4 + $0x1bc] ss:$36 sps:$4 sm:$0xff]  }
 0x611   :  { %2091 = vmatpush3.bf16.msra.mxu0 %v2195_v49  ;;  %v2244_v49 = vld [vmem:[%s2854_s4 + $0x10] ss:$36 sps:$4 sm:$0xff]  }
 0x612   :  { %2092 = vmatprep.subr.bf16.mxu0 %v2405_v33 }
 0x615   :  { %2093 = vmatpush3.bf16.msra.mxu0 %v2196_v60  ;;  %v2247_v60 = vld [vmem:[%s2854_s4 + $0x18] ss:$36 sps:$4 sm:$0xff]  }
 0x616   :  { %2094 = vmatprep.subr.bf16.mxu0 %v2405_v33 }
 0x619   :  { %2095 = vmatpush3.bf16.msra.mxu0 %v2197_v61 }
 0x61a   :  { %2096 = vmatprep.subr.bf16.mxu0 %v2405_v33 }
 0x61d   :  { %2097 = vmatpush3.bf16.msra.mxu0 %v2198_v62 }
 0x61e   :  { %2098 = vmatprep.subr.bf16.mxu0 %v2405_v33 }
 0x621   :  { %2099 = vmatpush3.bf16.msra.mxu0 %v2199_v63 }
 0x622   :  { %2100 = vmatprep.subr.bf16.mxu0 %v2405_v33 }
 0x625   :  { %2101 = vmatpush3.bf16.msra.mxu0 %v2200_v0 }
 0x626   :  { %2102 = vmatprep.subr.bf16.mxu0 %v2405_v33 }
 0x629   :  { %2103 = vmatpush3.bf16.msra.mxu0 %v2201_v1 }
 0x62a   :  { %1230 = vmatprep.subr.bf16.mxu0 %v2207_v26 }
 0x683   :  { %v816_v51 = vpop.xlane.xlu0 %815 }
 0x684   :  { %2306 = vrcp.f32 %v816_v51  ;;  %v2237_v51 = vld [vmem:[%s2854_s4 + $0xac] ss:$36 sps:$4 sm:$0xff]  }
 0x687   :  { %v819_v52 = vpop.xlane.xlu1 %818  ;;  %v827_v53 = vpop.permute.xlu0 %826 }
 0x688   :  { %2308 = vrcp.f32 %v819_v52  ;;  %2083 = vmatpush3.bf16.msra.mxu1 %v827_v53  ;;  %v2232_v52 = vld [vmem:[%s2854_s4 + $0xa0] ss:$36 sps:$4 sm:$0xff]   ;;  %v2235_v53 = vld [vmem:[%s2854_s4 + $0xa8] ss:$36 sps:$4 sm:$0xff]  }
 0x691   :  { %v2307_v54 = vpop.eup %2306 }
 0x692   :  { %v822_v56 = vmul.f32 %v2307_v54, %v2303_v45  ;;  %v2231_v45 = vld [vmem:[%s2854_s4 + $0xf4] ss:$36 sps:$4 sm:$0xff]   ;;  %v2240_v54 = vld [vmem:[%s2854_s4 + $0x5c] ss:$36 sps:$4 sm:$0xff]  }
 0x695   :  { %v2309_v55 = vpop.eup %2308 }
 0x696   :  { %v823_v57 = vmul.f32 %v2309_v55, %v2305_v48  ;;  %v2229_v48 = vld [vmem:[%s2854_s4 + $0xf0] ss:$36 sps:$4 sm:$0xff]   ;;  %v2243_v55 = vld [vmem:[%s2854_s4 + $0x64] ss:$36 sps:$4 sm:$0xff]  }
 0x698   :  { %v824_v58 = vpack.c.bf16 %v823_v57, %v822_v56  ;;  %v2238_v56 = vld [vmem:[%s2854_s4 + $0x58] ss:$36 sps:$4 sm:$0xff]   ;;  %v2241_v57 = vld [vmem:[%s2854_s4 + $0x60] ss:$36 sps:$4 sm:$0xff]  }
 0x69a   :  { %2085 = vmatmul.mubr.msk.bf16.vlgmr.msra.gmra.mxu1 %vm677_vm2, %v824_v58  ;;  %v2246_v58 = vld [vmem:[%s2854_s4 + $0x14] ss:$36 sps:$4 sm:$0xff]  }
 0x69b   :  { %1219 = vmatprep.mubr.bf16.mxu1 %v2406_v47 }
 0x75a   :  { %v866_v2 = vpop.f32.mrf.mxu1 }
 0x75c   :  { %v2086_v3 = vpop.f32.mrf.mxu1 }
 0x75e   :  { %v869_v4 = vpop.f32.mrf.mxu1 }
 0x75f   :  { %v2138_v5 = vpack.i.bf16 %v869_v4, %v866_v2 }
 0x760   :  { %v2087_v6 = vpop.f32.mrf.mxu1 }
 0x761   :  { %2139 = vrot.lane.b32.xlu1 %v2138_v5, %s2400_s29 }
 0x7d3   :  { %v2140_v7 = vpop.permute.xlu1 %2139 }
 0x7d4   :  { %v2142_v8 = vunpack.i.h.bf16 %v2140_v7  ;;  %v2141_v9 = vunpack.i.l.bf16 %v2140_v7 }
 0x7d6   :  { %v882_v10 = vsel %vm625_vm1, %v2616_v22, %v2142_v8  ;;  %v881_v11 = vsel %vm625_vm1, %v2614_v18, %v2141_v9 }
 0x7d7   :  { %v883_v12 = vpack.c.bf16 %v882_v10, %v881_v11 }
 0x7d9   :  { %2105 = vmatmul.mubr.bf16.vlgmr.msra.gmra.mxu0 %v883_v12 }
 0x7da   :  { %1262 = vmatprep.mubr.bf16.mxu0 %v2406_v47  ;;  %1231 = vmatpush1.bf16.msra.mxu0 %v2205_v27  ;;  %v2251_v27 = vld [vmem:[#allocation4 + $0xf8] sm:$0xff]  }
 0x7db   :  { %1232 = vmatprep.subr.bf16.mxu0 %v2213_v30  ;;  %v2253_v30 = vld [vmem:[#allocation4 + $0xb8] sm:$0xff]  }
 0x7de   :  { %1233 = vmatpush1.bf16.msra.mxu0 %v2211_v32  ;;  %v2255_v32 = vld [vmem:[#allocation4 + $0xf0] sm:$0xff]  }
 0x7df   :  { %1234 = vmatprep.subr.bf16.mxu0 %v2219_v36  ;;  %v2257_v36 = vld [vmem:[#allocation4 + $0xb0] sm:$0xff]  }
 0x7e2   :  { %1235 = vmatpush1.bf16.msra.mxu0 %v2217_v39  ;;  %v2259_v39 = vld [vmem:[#allocation4 + $0xe8] sm:$0xff]  }
 0x7e3   :  { %1236 = vmatprep.subr.bf16.mxu0 %v2225_v43  ;;  %v2263_v43 = vld [vmem:[#allocation4 + $0xe0] sm:$0xff]  }
 0x7e6   :  { %1237 = vmatpush1.bf16.msra.mxu0 %v2223_v42  ;;  %v2262_v42 = vld [vmem:[#allocation4 + $0x60] sm:$0xff]  }
 0x7e7   :  { %1238 = vmatprep.subr.bf16.mxu0 %v2231_v45  ;;  %v2265_v45 = vld [vmem:[#allocation4 + $0xa0] sm:$0xff]  }
 0x7ea   :  { %1239 = vmatpush1.bf16.msra.mxu0 %v2229_v48  ;;  %v2267_v48 = vld [vmem:[#allocation4 + $0xd8] sm:$0xff]  }
 0x7eb   :  { %1240 = vmatprep.subr.bf16.mxu0 %v2237_v51  ;;  %v2269_v51 = vld [vmem:[#allocation4 + $0x98] sm:$0xff]  }
 0x7ee   :  { %1241 = vmatpush1.bf16.msra.mxu0 %v2235_v53  ;;  %v2271_v53 = vld [vmem:[#allocation4 + $0xd0] sm:$0xff]  }
 0x7ef   :  { %1242 = vmatprep.subr.bf16.mxu0 %v2243_v55  ;;  %v2273_v55 = vld [vmem:[#allocation4 + $0x90] sm:$0xff]  }
 0x7f2   :  { %1243 = vmatpush1.bf16.msra.mxu0 %v2241_v57  ;;  %v2275_v57 = vld [vmem:[#allocation4 + $0xc8] sm:$0xff]  }
 0x7f3   :  { %1244 = vmatprep.subr.bf16.mxu0 %v2249_v59  ;;  %v2277_v59 = vld [vmem:[#allocation4 + $0x88] sm:$0xff]  }
 0x7f6   :  { %1245 = vmatpush1.bf16.msra.mxu0 %v2247_v60  ;;  %v2279_v60 = vld [vmem:[#allocation4 + $0xc0] sm:$0xff]  }
 0x7f7   :  { %2013 = vmatprep.subr.bf16.mxu0 %v2251_v27 }
 0x899   :  { %v966_v14 = vpop.f32.mrf.mxu0 }
 0x89a   :  { %v967_v15 = vadd.f32 %v966_v14, %v72_v13 }
 0x89b   :  { %v2106_v16 = vpop.f32.mrf.mxu0 }
 0x89c   :  { %v2664_v17 = vadd.f32 %v967_v15, %v2470_v23  ;;  %v2204_v23 = vld [vmem:[%s2854_s4 + $0x20c] ss:$36 sps:$4 sm:$0xff]  }
 0x89d   :  { %v969_v19 = vpop.f32.mrf.mxu0  ;;  %1187 = vmatprep.subr.bf16.mxu1 %v2204_v23 }
 0x89e   :  { %v970_v24 = vadd.f32 %v969_v19, %v72_v13  ;;  %975 = vadd.xlane.f32.xlu1 %v2664_v17  ;;  %v981_v18 = vmul.f32 %v2664_v17, %v2664_v17  ;;  %v73_v13 = vld [vmem:[#allocation6 + $0x4] ss:$0 sm:$0xff] }
 0x89f   :  { %v2107_v25 = vpop.f32.mrf.mxu0 }
 0x8a0   :  { %v2668_v22 = vadd.f32 %v970_v24, %v2478_v28  ;;  %v2202_v28 = vld [vmem:[%s2854_s4 + $0x208] ss:$36 sps:$4 sm:$0xff]   ;;  %v74_v25 = vld [vmem:[#allocation6 + $0x5] ss:$0 sm:$0xff] }
 0x8a1   :  { %1188 = vmatpush1.bf16.msra.mxu1 %v2202_v28  ;;  %v2250_v28 = vld [vmem:[#allocation4 + $0x78] sm:$0xff]  }
 0x8a2   :  { %977 = vadd.xlane.f32.xlu0 %v2668_v22  ;;  %v982_v47 = vmul.f32 %v2668_v22, %v2668_v22  ;;  %1189 = vmatprep.subr.bf16.mxu1 %v2210_v29  ;;  %v2252_v29 = vld [vmem:[#allocation4 + $0x38] sm:$0xff]  }
 0x8a4   :  { %985 = vadd.xlane.f32.xlu1 %v982_v47 }
 0x8a5   :  { %1190 = vmatpush1.bf16.msra.mxu1 %v2208_v31  ;;  %v2254_v31 = vld [vmem:[#allocation4 + $0x70] sm:$0xff]  }
 0x8a6   :  { %983 = vadd.xlane.f32.xlu0 %v981_v18  ;;  %1191 = vmatprep.subr.bf16.mxu1 %v2216_v34  ;;  %v2256_v34 = vld [vmem:[#allocation4 + $0x30] sm:$0xff]  }
 0x8a9   :  { %1192 = vmatpush1.bf16.msra.mxu1 %v2214_v37  ;;  %v2258_v37 = vld [vmem:[#allocation4 + $0x68] sm:$0xff]  }
 0x8aa   :  { %1193 = vmatprep.subr.bf16.mxu1 %v2222_v41  ;;  %v2261_v41 = vld [vmem:[#allocation4 + $0xa8] sm:$0xff]  }
 0x8ad   :  { %1194 = vmatpush1.bf16.msra.mxu1 %v2220_v40  ;;  %v2260_v40 = vld [vmem:[#allocation4 + $0x28] sm:$0xff]  }
 0x8ae   :  { %1195 = vmatprep.subr.bf16.mxu1 %v2228_v44  ;;  %v2264_v44 = vld [vmem:[#allocation4 + $0x20] sm:$0xff]  }
 0x8b1   :  { %1196 = vmatpush1.bf16.msra.mxu1 %v2226_v46  ;;  %v2266_v46 = vld [vmem:[#allocation4 + $0x58] sm:$0xff]  }
 0x8b2   :  { %1197 = vmatprep.subr.bf16.mxu1 %v2234_v50  ;;  %v2268_v50 = vld [vmem:[#allocation4 + $0x18] sm:$0xff]  }
 0x8b5   :  { %1198 = vmatpush1.bf16.msra.mxu1 %v2232_v52  ;;  %v2270_v52 = vld [vmem:[#allocation4 + $0x50] sm:$0xff]  }
 0x8b6   :  { %1199 = vmatprep.subr.bf16.mxu1 %v2240_v54  ;;  %v2272_v54 = vld [vmem:[#allocation4 + $0x10] sm:$0xff]  }
 0x8b9   :  { %1200 = vmatpush1.bf16.msra.mxu1 %v2238_v56  ;;  %v2274_v56 = vld [vmem:[#allocation4 + $0x48] sm:$0xff]  }
 0x8ba   :  { %1201 = vmatprep.subr.bf16.mxu1 %v2246_v58  ;;  %v2276_v58 = vld [vmem:[#allocation4 + $0x8] sm:$0xff]  }
 0x8bd   :  { %1202 = vmatpush1.bf16.msra.mxu1 %v2244_v49  ;;  %v2278_v49 = vld [vmem:[#allocation4 + $0x40] sm:$0xff]  }
 0x8be   :  { %1991 = vmatprep.subr.bf16.mxu1 %v2250_v28 }
 0x927   :  { %v976_v61 = vpop.xlane.xlu1 %975 }
 0x928   :  { %v979_v63 = vmul.f32 0.0078125, %v976_v61  ;;  %v2280_v61 = vld [vmem:[#allocation4] sm:$0xff]  }
 0x92a   :  { %v989_v5 = vmul.f32 %v979_v63, %v979_v63  ;;  %v993_v14 = vsub.f32 %v2664_v17, %v979_v63  ;;  %v76_v63 = vld [vmem:[#allocation6 + $0x6] ss:$8 sm:$0xf] }
 0x92b   :  { %v978_v62 = vpop.xlane.xlu0 %977 }
 0x92c   :  { %v980_v0 = vmul.f32 0.0078125, %v978_v62  ;;  %v2281_v62 = vld [vmem:[#allocation4 + $0x80] sm:$0xff]  }
 0x92d   :  { %v986_v1 = vpop.xlane.xlu1 %985 }
 0x92e   :  { %v990_v2 = vmul.f32 %v980_v0, %v980_v0  ;;  %v988_v3 = vmul.f32 0.0078125, %v986_v1  ;;  %v994_v11 = vsub.f32 %v2668_v22, %v980_v0  ;;  %v1021_v0 = vsub.s32 3, %v2574_v20 }
 0x92f   :  { %v984_v4 = vpop.xlane.xlu0 %983  ;;  %v1010_v1 = vrot.slane %v76_v63, %v395_v35 }
 0x930   :  { %v992_v6 = vsub.f32 %v988_v3, %v990_v2  ;;  %v987_v7 = vmul.f32 0.0078125, %v984_v4  ;;  %v1018_v2 = vrot.slane %v76_v63, %v403_v38  ;;  %v1014_v3 = vrot.slane %v76_v63, %v399_v21 }
 0x931   :  { %v1022_v4 = vrot.slane %v76_v63, %v1021_v0 }
 0x932   :  { %v996_v8 = vadd.f32 1e-06, %v992_v6  ;;  %v991_v9 = vsub.f32 %v987_v7, %v989_v5 }
 0x934   :  { %2310 = vrsqrt.f32 %v996_v8  ;;  %v995_v10 = vadd.f32 1e-06, %v991_v9 }
 0x936   :  { %2312 = vrsqrt.f32 %v995_v10 }
 0x941   :  { %v2311_v12 = vpop.eup %2310 }
 0x942   :  { %v1000_v15 = vmul.f32 %v2311_v12, %v994_v11 }
 0x943   :  { %v2313_v16 = vpop.eup %2312 }
 0x944   :  { %v999_v19 = vmul.f32 %v2313_v16, %v993_v14  ;;  %v1002_v24 = vmul.f32 %v1000_v15, %v73_v13 }
 0x946   :  { %v1001_v47 = vmul.f32 %v999_v19, %v73_v13  ;;  %v1004_v23 = vadd.f32 %v1002_v24, %v74_v25 }
 0x948   :  { %v1003_v18 = vadd.f32 %v1001_v47, %v74_v25 }
 0x94a   :  { %v1005_v26 = vpack.c.bf16 %v1004_v23, %v1003_v18 }
 0x94c   :  { %1220 = vmatmul.mubr.bf16.vlgmr.msra.gmra.mxu1 %v1005_v26  ;;  %1263 = vmatmul.mubr.bf16.vlgmr.msra.gmra.mxu0 %v1005_v26 }
 0x94d   :  { %1992 = vmatpush3.bf16.msra.mxu1 %v2252_v29  ;;  %2014 = vmatpush3.bf16.msra.mxu0 %v2253_v30 }
 0x94e   :  { %1993 = vmatprep.subr.bf16.mxu1 %v2254_v31  ;;  %2015 = vmatprep.subr.bf16.mxu0 %v2255_v32 }
 0x951   :  { %1994 = vmatpush3.bf16.msra.mxu1 %v2256_v34  ;;  %2016 = vmatpush3.bf16.msra.mxu0 %v2257_v36 }
 0x952   :  { %1995 = vmatprep.subr.bf16.mxu1 %v2258_v37  ;;  %2017 = vmatprep.subr.bf16.mxu0 %v2259_v39 }
 0x955   :  { %1996 = vmatpush3.bf16.msra.mxu1 %v2260_v40  ;;  %2018 = vmatpush3.bf16.msra.mxu0 %v2261_v41 }
 0x956   :  { %1997 = vmatprep.subr.bf16.mxu1 %v2262_v42  ;;  %2019 = vmatprep.subr.bf16.mxu0 %v2263_v43 }
 0x959   :  { %1998 = vmatpush3.bf16.msra.mxu1 %v2264_v44  ;;  %2020 = vmatpush3.bf16.msra.mxu0 %v2265_v45 }
 0x95a   :  { %1999 = vmatprep.subr.bf16.mxu1 %v2266_v46  ;;  %2021 = vmatprep.subr.bf16.mxu0 %v2267_v48 }
 0x95d   :  { %2000 = vmatpush3.bf16.msra.mxu1 %v2268_v50  ;;  %2022 = vmatpush3.bf16.msra.mxu0 %v2269_v51 }
 0x95e   :  { %2001 = vmatprep.subr.bf16.mxu1 %v2270_v52  ;;  %2023 = vmatprep.subr.bf16.mxu0 %v2271_v53 }
 0x961   :  { %2002 = vmatpush3.bf16.msra.mxu1 %v2272_v54  ;;  %2024 = vmatpush3.bf16.msra.mxu0 %v2273_v55 }
 0x962   :  { %2003 = vmatprep.subr.bf16.mxu1 %v2274_v56  ;;  %2025 = vmatprep.subr.bf16.mxu0 %v2275_v57 }
 0x965   :  { %2004 = vmatpush3.bf16.msra.mxu1 %v2276_v58  ;;  %2026 = vmatpush3.bf16.msra.mxu0 %v2277_v59 }
 0x966   :  { %2005 = vmatprep.subr.bf16.mxu1 %v2278_v49  ;;  %2027 = vmatprep.subr.bf16.mxu0 %v2279_v60 }
 0x969   :  { %2006 = vmatpush3.bf16.msra.mxu1 %v2280_v61  ;;  %2028 = vmatpush3.bf16.msra.mxu0 %v2281_v62 }
 0x96a   :  { %2108 = vmatprep.subr.bf16.mxu1 %v2405_v33 }
 0xa0c   :  { %v1221_v5 = vpop.f32.mrf.mxu1  ;;  %v1264_v6 = vpop.f32.mrf.mxu0 }
 0xa0d   :  { %v2781_v7 = vadd.f32 %v1221_v5, %v1010_v1  ;;  %v2783_v8 = vadd.f32 %v1264_v6, %v1018_v2 }
 0xa0e   :  { %v1223_v9 = vpop.f32.mrf.mxu1  ;;  %v1266_v10 = vpop.f32.mrf.mxu0 }
 0xa0f   :  { %v1281_v11 = vmul.f32 0.044715, %v2781_v7  ;;  %v1283_v12 = vmul.f32 0.044715, %v2783_v8  ;;  %v1224_v35 = vadd.f32 %v1223_v9, %v1014_v3  ;;  %v2787_v13 = vadd.f32 %v1266_v10, %v1022_v4 }
 0xa10   :  { %v1225_v38 = vpop.f32.mrf.mxu1  ;;  %v1268_v14 = vpop.f32.mrf.mxu0  ;;  %v1273_v10 = vmul.f32 0.5, %v2781_v7 }
 0xa11   :  { %v1289_v20 = vmul.f32 %v1281_v11, %v2781_v7  ;;  %v1291_v21 = vmul.f32 %v1283_v12, %v2783_v8  ;;  %v1282_v15 = vmul.f32 0.044715, %v1224_v35  ;;  %v1284_v16 = vmul.f32 0.044715, %v2787_v13 }
 0xa12   :  { %v1226_v19 = vadd.f32 %v1225_v38, %v1010_v1  ;;  %v2792_v24 = vadd.f32 %v1268_v14, %v1018_v2  ;;  %v1227_v25 = vpop.f32.mrf.mxu1  ;;  %v1270_v47 = vpop.f32.mrf.mxu0  ;;  %v1274_v6 = vmul.f32 0.5, %v1224_v35 }
 0xa13   :  { %v1297_v18 = vmul.f32 %v1289_v20, %v2781_v7  ;;  %v1299_v23 = vmul.f32 %v1291_v21, %v2783_v8  ;;  %v1290_v26 = vmul.f32 %v1282_v15, %v1224_v35  ;;  %v1292_v28 = vmul.f32 %v1284_v16, %v2787_v13 }
 0xa14   :  { %v1285_v27 = vmul.f32 0.044715, %v1226_v19  ;;  %v1287_v29 = vmul.f32 0.044715, %v2792_v24  ;;  %v1228_v30 = vadd.f32 %v1227_v25, %v1014_v3  ;;  %v1271_v31 = vadd.f32 %v1270_v47, %v1022_v4 }
 0xa15   :  { %v1305_v32 = vadd.f32 %v1297_v18, %v2781_v7  ;;  %v1307_v34 = vadd.f32 %v1299_v23, %v2783_v8  ;;  %v1298_v36 = vmul.f32 %v1290_v26, %v1224_v35  ;;  %v1300_v37 = vmul.f32 %v1292_v28, %v2787_v13 }
 0xa16   :  { %v1293_v39 = vmul.f32 %v1285_v27, %v1226_v19  ;;  %v1295_v40 = vmul.f32 %v1287_v29, %v2792_v24  ;;  %v1286_v41 = vmul.f32 0.044715, %v1228_v30  ;;  %v1288_v42 = vmul.f32 0.044715, %v1271_v31 }
 0xa17   :  { %v1313_v43 = vmul.f32 0.7978846, %v1305_v32  ;;  %v1315_v44 = vmul.f32 0.7978846, %v1307_v34  ;;  %v1306_v45 = vadd.f32 %v1298_v36, %v1224_v35  ;;  %v1308_v53 = vadd.f32 %v1300_v37, %v2787_v13 }
 0xa18   :  { %v1301_v46 = vmul.f32 %v1293_v39, %v1226_v19  ;;  %v1303_v48 = vmul.f32 %v1295_v40, %v2792_v24  ;;  %v1294_v50 = vmul.f32 %v1286_v41, %v1228_v30  ;;  %v1296_v51 = vmul.f32 %v1288_v42, %v1271_v31  ;;  %v77_v41 = vld [vmem:[#allocation6 + $0x7] ss:$0 sm:$0xff] }
 0xa19   :  { %v1314_v52 = vmul.f32 0.7978846, %v1306_v45  ;;  %2314 = vtanh.f32 %v1313_v43  ;;  %v1316_v58 = vmul.f32 0.7978846, %v1308_v53  ;;  %v1277_v14 = vmul.f32 0.5, %v1226_v19 }
 0xa1a   :  { %v1309_v54 = vadd.f32 %v1301_v46, %v1226_v19  ;;  %v1311_v55 = vadd.f32 %v1303_v48, %v2792_v24  ;;  %v1302_v56 = vmul.f32 %v1294_v50, %v1228_v30  ;;  %2316 = vtanh.f32 %v1315_v44 }
 0xa1b   :  { %v1304_v57 = vmul.f32 %v1296_v51, %v1271_v31  ;;  %2318 = vtanh.f32 %v1314_v52  ;;  %v1278_v16 = vmul.f32 0.5, %v1228_v30  ;;  %v1279_v47 = vmul.f32 0.5, %v2792_v24 }
 0xa1c   :  { %v1317_v59 = vmul.f32 0.7978846, %v1309_v54  ;;  %v1319_v49 = vmul.f32 0.7978846, %v1311_v55  ;;  %v1310_v60 = vadd.f32 %v1302_v56, %v1228_v30  ;;  %2320 = vtanh.f32 %v1316_v58 }
 0xa1d   :  { %v1312_v61 = vadd.f32 %v1304_v57, %v1271_v31  ;;  %v1276_v23 = vmul.f32 0.5, %v2787_v13  ;;  %v1280_v26 = vmul.f32 0.5, %v1271_v31  ;;  %v1275_v7 = vmul.f32 0.5, %v2783_v8 }
 0xa1e   :  { %2322 = vtanh.f32 %v1317_v59  ;;  %v1318_v62 = vmul.f32 0.7978846, %v1310_v60  ;;  %v2282_v60 = vld [vmem:[%s2854_s4 + $0x218] ss:$36 sps:$4 sm:$0xff]  }
 0xa1f   :  { %2324 = vtanh.f32 %v1319_v49  ;;  %v1320_v63 = vmul.f32 0.7978846, %v1312_v61  ;;  %v2285_v61 = vld [vmem:[%s2854_s4 + $0x140] ss:$36 sps:$4 sm:$0xff]  }
 0xa20   :  { %2326 = vtanh.f32 %v1318_v62  ;;  %v2286_v62 = vld [vmem:[%s2854_s4 + $0xf8] ss:$36 sps:$4 sm:$0xff]  }
 0xa21   :  { %2328 = vtanh.f32 %v1320_v63  ;;  %v2287_v63 = vld [vmem:[%s2854_s4 + $0xb0] ss:$36 sps:$4 sm:$0xff]  }
 0xa26   :  { %v2315_v0 = vpop.eup %2314 }
 0xa27   :  { %v2317_v1 = vpop.eup %2316  ;;  %v1329_v20 = vadd.f32 1.0, %v2315_v0  ;;  %v2288_v0 = vld [vmem:[%s2854_s4 + $0x68] ss:$36 sps:$4 sm:$0xff]  }
 0xa28   :  { %v2319_v2 = vpop.eup %2318  ;;  %v1331_v18 = vadd.f32 1.0, %v2317_v1  ;;  %v2289_v1 = vld [vmem:[%s2854_s4 + $0x20] ss:$36 sps:$4 sm:$0xff]  }
 0xa29   :  { %v2321_v3 = vpop.eup %2320  ;;  %v1330_v9 = vadd.f32 1.0, %v2319_v2  ;;  %v1337_v36 = vmul.f32 %v1329_v20, %v1273_v10 }
 0xa2a   :  { %v1332_v38 = vadd.f32 1.0, %v2321_v3  ;;  %v1339_v39 = vmul.f32 %v1331_v18, %v1275_v7 }
 0xa2b   :  { %v2323_v4 = vpop.eup %2322  ;;  %v1338_v27 = vmul.f32 %v1330_v9, %v1274_v6 }
 0xa2c   :  { %v2325_v5 = vpop.eup %2324  ;;  %v1333_v11 = vadd.f32 1.0, %v2323_v4  ;;  %v1340_v34 = vmul.f32 %v1332_v38, %v1276_v23 }
 0xa2d   :  { %v2327_v12 = vpop.eup %2326  ;;  %v1335_v21 = vadd.f32 1.0, %v2325_v5 }
 0xa2e   :  { %v2329_v15 = vpop.eup %2328  ;;  %v1334_v25 = vadd.f32 1.0, %v2327_v12  ;;  %v1341_v35 = vmul.f32 %v1333_v11, %v1277_v14 }
 0xa2f   :  { %v1336_v28 = vadd.f32 1.0, %v2329_v15  ;;  %v1343_v32 = vmul.f32 %v1335_v21, %v1279_v47  ;;  %v78_v47 = vld [vmem:[#allocation6 + $0x20] ss:$0 sm:$0xff] }
 0xa30   :  { %v1342_v29 = vmul.f32 %v1334_v25, %v1278_v16  ;;  %v1345_v40 = vpack.c.bf16 %v1341_v35, %v1337_v36  ;;  %v79_v35 = vld [vmem:[#allocation6 + $0x21] ss:$0 sm:$0xff] }
 0xa31   :  { %v1344_v19 = vmul.f32 %v1336_v28, %v1280_v26  ;;  %v1347_v24 = vpack.c.bf16 %v1343_v32, %v1339_v39 }
 0xa32   :  { %v1346_v37 = vpack.c.bf16 %v1342_v29, %v1338_v27 }
 0xa33   :  { %v1348_v30 = vpack.c.bf16 %v1344_v19, %v1340_v34  ;;  %v80_v34 = vld [vmem:[#allocation6 + $0x22] ss:$0 sm:$0xff] }
 0xa34   :  { %1637 = vmatprep.mubr.bf16.mxu1 %v1346_v37 }
 0xa35   :  { %1678 = vmatprep.mubr.bf16.mxu0 %v1348_v30  ;;  %1638 = vmatmul.mubr.bf16.vlgmr.msra.gmra.mxu1 %v1345_v40 }
 0xa36   :  { %1679 = vmatmul.mubr.bf16.vlgmr.msra.gmra.mxu0 %v1347_v24  ;;  %2124 = vmatprep.mubr.msk.bf16.mxu1 %vm2407_vm0, %v2405_v33 }
 0xa37   :  { %2109 = vmatpush3.bf16.msra.mxu1 %v2282_v60 }
 0xa38   :  { %2110 = vmatprep.subr.bf16.mxu1 %v2405_v33 }
 0xaf5   :  { %v2007_v13 = vpop.f32.mrf.mxu1 }
 0xaf6   :  { %v2029_v31 = vpop.f32.mrf.mxu0 }
 0xaf7   :  { %v2008_v8 = vpop.f32.mrf.mxu1 }
 0xaf8   :  { %v2009_v42 = vadd.f32 %v2008_v8, %v2007_v13  ;;  %v2030_v43 = vpop.f32.mrf.mxu0 }
 0xaf9   :  { %v2010_v44 = vpop.f32.mrf.mxu1  ;;  %v2031_v46 = vadd.f32 %v2030_v43, %v2029_v31 }
 0xafa   :  { %v1640_v45 = vadd.f32 %v2009_v42, %v77_v41  ;;  %v2032_v48 = vpop.f32.mrf.mxu0 }
 0xafb   :  { %v2011_v50 = vpop.f32.mrf.mxu1 }
 0xafc   :  { %v1681_v51 = vadd.f32 %v2031_v46, %v1640_v45  ;;  %v2012_v52 = vadd.f32 %v2011_v50, %v2010_v44  ;;  %v2033_v53 = vpop.f32.mrf.mxu0 }
 0xafd   :  { %v2034_v55 = vadd.f32 %v2033_v53, %v2032_v48 }
 0xafe   :  { %v1643_v54 = vadd.f32 %v2012_v52, %v77_v41  ;;  %v1687_v56 = vadd.f32 %v1681_v51, %v2664_v17  ;;  %v2283_v17 = vld [vmem:[%s2854_s4 + $0x1d0] ss:$36 sps:$4 sm:$0xff]  }
 0xaff   :  { %2111 = vmatpush3.bf16.msra.mxu1 %v2283_v17 }
 0xb00   :  { %v1684_v57 = vadd.f32 %v2034_v55, %v1643_v54  ;;  %1689 = vadd.xlane.f32.xlu0 %v1687_v56  ;;  %v1695_v59 = vmul.f32 %v1687_v56, %v1687_v56  ;;  %2112 = vmatprep.subr.bf16.mxu1 %v2405_v33 }
 0xb02   :  { %v1688_v58 = vadd.f32 %v1684_v57, %v2668_v22  ;;  %v2284_v22 = vld [vmem:[%s2854_s4 + $0x188] ss:$36 sps:$4 sm:$0xff]  }
 0xb03   :  { %2113 = vmatpush3.bf16.msra.mxu1 %v2284_v22 }
 0xb04   :  { %1691 = vadd.xlane.f32.xlu1 %v1688_v58  ;;  %1697 = vadd.xlane.f32.xlu0 %v1695_v59  ;;  %v1696_v49 = vmul.f32 %v1688_v58, %v1688_v58 }
 0xb05   :  { %2114 = vmatprep.subr.bf16.mxu1 %v2405_v33 }
 0xb07   :  { %2115 = vmatpush3.bf16.msra.mxu1 %v2285_v61 }
 0xb08   :  { %1699 = vadd.xlane.f32.xlu1 %v1696_v49  ;;  %2116 = vmatprep.subr.bf16.mxu1 %v2405_v33 }
 0xb0b   :  { %2117 = vmatpush3.bf16.msra.mxu1 %v2286_v62 }
 0xb0c   :  { %2118 = vmatprep.subr.bf16.mxu1 %v2405_v33 }
 0xb0f   :  { %2119 = vmatpush3.bf16.msra.mxu1 %v2287_v63 }
 0xb10   :  { %2120 = vmatprep.subr.bf16.mxu1 %v2405_v33 }
 0xb13   :  { %2121 = vmatpush3.bf16.msra.mxu1 %v2288_v0 }
 0xb14   :  { %2122 = vmatprep.subr.bf16.mxu1 %v2405_v33 }
 0xb17   :  { %2123 = vmatpush3.bf16.msra.mxu1 %v2289_v1 }
 0xb89   :  { %v1690_v2 = vpop.xlane.xlu0 %1689 }
 0xb8a   :  { %v1693_v3 = vmul.f32 0.0078125, %v1690_v2 }
 0xb8c   :  { %v1703_v6 = vmul.f32 %v1693_v3, %v1693_v3  ;;  %v1707_v16 = vsub.f32 %v1687_v56, %v1693_v3 }
 0xb8d   :  { %v1692_v4 = vpop.xlane.xlu1 %1691  ;;  %v1698_v5 = vpop.xlane.xlu0 %1697 }
 0xb8e   :  { %v1694_v9 = vmul.f32 0.0078125, %v1692_v4  ;;  %v1701_v10 = vmul.f32 0.0078125, %v1698_v5 }
 0xb90   :  { %v1705_v11 = vsub.f32 %v1701_v10, %v1703_v6  ;;  %v1704_v38 = vmul.f32 %v1694_v9, %v1694_v9  ;;  %v1708_v18 = vsub.f32 %v1688_v58, %v1694_v9 }
 0xb91   :  { %v1700_v12 = vpop.xlane.xlu1 %1699 }
 0xb92   :  { %v1709_v14 = vadd.f32 1e-06, %v1705_v11  ;;  %v1702_v20 = vmul.f32 0.0078125, %v1700_v12 }
 0xb94   :  { %2330 = vrsqrt.f32 %v1709_v14  ;;  %v1706_v21 = vsub.f32 %v1702_v20, %v1704_v38 }
 0xb96   :  { %v1710_v15 = vadd.f32 1e-06, %v1706_v21 }
 0xb98   :  { %2332 = vrsqrt.f32 %v1710_v15 }
 0xba1   :  { %v2331_v25 = vpop.eup %2330 }
 0xba2   :  { %v1713_v33 = vmul.f32 %v2331_v25, %v1707_v16 }
 0xba4   :  { %v1715_v28 = vmul.f32 %v1713_v33, %v78_v47 }
 0xba5   :  { %v2333_v23 = vpop.eup %2332 }
 0xba6   :  { %v1714_v26 = vmul.f32 %v2333_v23, %v1708_v18  ;;  %v1717_v29 = vadd.f32 %v1715_v28, %v79_v35 }
 0xba8   :  { %v1716_v27 = vmul.f32 %v1714_v26, %v78_v47 }
 0xbaa   :  { %v1718_v7 = vadd.f32 %v1716_v27, %v79_v35 }
 0xbac   :  { %v1719_v32 = vpack.c.bf16 %v1718_v7, %v1717_v29 }
 0xbae   :  { %2125 = vmatmul.mubr.bf16.vlgmr.msra.gmra.mxu1 %v1719_v32 }
 0xc6e   :  { %v1802_v19 = vpop.f32.mrf.mxu1 }
 0xc6f   :  { %v1803_v36 = vadd.f32 %v1802_v19, %v80_v34 }
 0xc70   :  { %v2126_v37 = vpop.f32.mrf.mxu1 }
 0xc71   :  { %1809 = vst [vmem:[%s2857_s7] sm:$0xff] %v1803_v36 }
 0xc72   :  { %v1805_v39 = vpop.f32.mrf.mxu1 }
 0xc73   :  { %v1806_v30 = vadd.f32 %v1805_v39, %v80_v34 }
 0xc74   :  { %v2127_v40 = vpop.f32.mrf.mxu1 }
 0xc75   :  { %1810 = vst [vmem:[%s2857_s7 + $0x8] sm:$0xff] %v1806_v30 }
 0xc76   :  { %1815 = vsyncpa [#allocation3], 1 }
 0xc77   :  { %1816 = vsyncpa [#allocation5], 1 }

</bundles_post_ra>
